<compile_context>
chip_gen: v7x
topology: tpu7x:2x2x1
jax: 0.10.0
libtpu: 0.0.40
codegen_flags: <defaults>
</compile_context>

<pallas_src>
import math
import functools

import jax
import jax.numpy as jnp
from jax.experimental import pallas as pl
from jax.experimental.pallas import tpu as pltpu


NEG_MASK = -10000.0
LN_EPS = 1e-12


# ----------------------------------------------------------------------------
# Kernel
# ----------------------------------------------------------------------------
def cross_attn_kernel(x_ref, ctx_ref, *rest, group, head_dim, has_mask):
    if has_mask:
        (mask_ref, wq_ref, bq_ref, wk_ref, bk_ref, wv_ref, bv_ref,
         wo_ref, bo_ref, gamma_ref, beta_ref, out_ref, acc_ref) = rest
    else:
        mask_ref = None
        (wq_ref, bq_ref, wk_ref, bk_ref, wv_ref, bv_ref,
         wo_ref, bo_ref, gamma_ref, beta_ref, out_ref, acc_ref) = rest

    hg = pl.program_id(1)
    nhg = pl.num_programs(1)

    Bt, Sq, H = x_ref.shape
    Sk = ctx_ref.shape[1]
    D = head_dim
    G = group
    dt = x_ref.dtype  # MXU input dtype (bf16 stays bf16; f32 stays f32)

    @pl.when(hg == 0)
    def _init():
        acc_ref[...] = jnp.zeros_like(acc_ref)

    # Sq / Sk are padded to multiples of 8 in the wrapper -> free reshapes.
    x2 = x_ref[...].reshape(Bt * Sq, H)
    c2 = ctx_ref[...].reshape(Bt * Sk, H)

    def _w(ref):  # weights may be streamed in a narrower dtype (bf16)
        w = ref[...]
        return w if w.dtype == dt else w.astype(dt)

    # Grouped projections: full-K (H) matmuls with N = G*D output columns,
    # f32 accumulation on the MXU.  1/sqrt(D) is already folded into wq/bq.
    q = (jnp.dot(x2, _w(wq_ref), preferred_element_type=jnp.float32)
         + bq_ref[...]).astype(dt)                                 # (Bt*Sq, G*D)
    k = (jnp.dot(c2, _w(wk_ref), preferred_element_type=jnp.float32)
         + bk_ref[...]).astype(dt)                                 # (Bt*Sk, G*D)
    v = (jnp.dot(c2, _w(wv_ref), preferred_element_type=jnp.float32)
         + bv_ref[...]).astype(dt)                                 # (Bt*Sk, G*D)

    mask = mask_ref[...] if has_mask else None                     # f32 already

    parts = []
    for g in range(G):  # short static loop over heads inside the group
        lo, hi = g * D, (g + 1) * D
        qg = q[:, lo:hi].reshape(Bt, Sq, D)
        kg = k[:, lo:hi].reshape(Bt, Sk, D)
        vg = v[:, lo:hi].reshape(Bt, Sk, D)

        # Contraction on the trailing head dim of BOTH operands -> no explicit
        # transpose of K.
        s = jnp.einsum("bqd,bkd->bqk", qg, kg,
                       preferred_element_type=jnp.float32)         # (Bt,Sq,Sk)
        if has_mask:
            s = s + mask

        m = jnp.max(s, axis=-1, keepdims=True)
        e = jnp.exp(s - m)
        denom = jnp.sum(e, axis=-1, keepdims=True)
        # EUP reciprocal runs in a separate bundle slot (effectively free).
        p = (e * pl.reciprocal(denom, approx=True)).astype(dt)
        # TODO(synk): attention_probs dropout omitted (deterministic/eval mode)

        ch = jnp.einsum("bqk,bkd->bqd", p, vg,
                        preferred_element_type=jnp.float32)
        parts.append(ch.astype(dt).reshape(Bt * Sq, D))

    ctx_h = parts[0] if G == 1 else jnp.concatenate(parts, axis=-1)

    # Distributed output projection: out = sum_g ctx_g @ Wo[rows of group g]
    acc_ref[...] += jnp.dot(ctx_h, _w(wo_ref),
                            preferred_element_type=jnp.float32)

    @pl.when(hg == nhg - 1)
    def _finalize():
        # bert_attnoutput: dense(+bias) -> (dropout=identity) -> residual -> LN
        y = acc_ref[...] + bo_ref[...] + x2.astype(jnp.float32)    # (Bt*Sq, H)
        mu = jnp.mean(y, axis=-1, keepdims=True)
        yc = y - mu
        var = jnp.mean(yc * yc, axis=-1, keepdims=True)
        norm = yc * jax.lax.rsqrt(var + LN_EPS)
        out = norm * gamma_ref[...] + beta_ref[...]
        out_ref[...] = out.reshape(Bt, Sq, H).astype(out_ref.dtype)


# ----------------------------------------------------------------------------
# Sizing helpers
# ----------------------------------------------------------------------------
def _round_up(x, m):
    return (x + m - 1) // m * m


def _vmem_limit_bytes():
    """Per-generation scoped VMEM limit: physical minus headroom, capped."""
    cap = None
    try:
        cap = pltpu.get_tpu_info().vmem_capacity_bytes
    except Exception:
        cap = None
    if not cap:
        cap = 64 * 1024 * 1024  # v7x-safe assumption
    limit = min(cap - 16 * 1024 * 1024, 100 * 1024 * 1024)
    return int(max(limit, 32 * 1024 * 1024))


def _pick_head_group(num_heads, head_dim, target_n=256):
    """Heads per grid step so the projection output width approaches the MXU
    width (256 on v6e/v7x; >=128 on v5e)."""
    g = max(1, min(num_heads, max(1, target_n // max(head_dim, 1))))
    while num_heads % g:
        g -= 1
    return g


def _pick_batch_block(B, Sq, Sk, H, GD, act_size, w_size, has_mask,
                      vmem_budget, target_rows=1024):
    """Pack batch elements so bt*Sq ~ target_rows, capped by a VMEM budget,
    keeping >= 2 batch blocks so the 'parallel' axis can split across cores."""
    def usage(bt):
        rows_q, rows_k = bt * Sq, bt * Sk
        u = 0
        u += 2 * rows_q * H * act_size            # x block (double-buffered)
        u += 2 * rows_k * H * act_size            # ctx block
        u += 2 * rows_q * H * act_size            # out block
        if has_mask:
            u += 2 * rows_q * Sk * 4              # mask block
        u += rows_q * H * 4                       # f32 accumulator scratch
        u += 8 * H * GD * w_size                  # wq/wk/wv/wo double-buffered
        u += (2 * rows_q + 2 * rows_k) * GD * 4   # q/k/v/ctx_h intermediates
        u += 2 * rows_q * Sk * 4                  # scores / probs
        return u

    bt = max(1, min(B, max(1, target_rows // max(Sq, 1))))
    while bt > 1 and usage(bt) > vmem_budget:
        bt -= 1
    if B >= 2:
        bt = min(bt, (B + 1) // 2)  # nb >= 2 -> both TCs get work on v7x
    return max(1, bt)


# ----------------------------------------------------------------------------
# One-time parameter preparation (hoisted out of the per-call path)
# ----------------------------------------------------------------------------
def prepare_params(params, num_heads, *, target_mxu_n=256, weight_dtype=None):
    """Pre-split weights per head-group, fold the 1/sqrt(D) scale into Wq/bq,
    and optionally cast streamed weights to bf16.  Call once."""
    H = params["wq"].shape[0]
    D = H // num_heads
    G = _pick_head_group(num_heads, D, target_mxu_n)
    NG = num_heads // G
    GD = G * D
    scale = 1.0 / math.sqrt(D)

    def cast_w(w):
        return w.astype(weight_dtype) if weight_dtype is not None else w

    def split_cols(w):   # (H_in, H_out) -> (NG, H_in, G*D): group column slabs
        return cast_w(w).reshape(H, NG, GD).transpose(1, 0, 2)

    def split_bias(b):   # (1, H) -> (NG, 1, G*D), kept f32
        return b.astype(jnp.float32).reshape(NG, 1, GD)

    def split_rows(w):   # (H_in, H_out) -> (NG, G*D, H_out): group row slabs
        return cast_w(w).reshape(NG, GD, H)

    f32 = jnp.float32
    return {
        "wq": split_cols(params["wq"].astype(f32) * scale),
        "bq": split_bias(params["bq"].astype(f32) * scale),
        "wk": split_cols(params["wk"]),
        "bk": split_bias(params["bk"]),
        "wv": split_cols(params["wv"]),
        "bv": split_bias(params["bv"]),
        "wo": split_rows(params["wo"]),
        "bo": params["bo"].astype(f32),
        "gamma": params["gamma"].astype(f32),
        "beta": params["beta"].astype(f32),
        "num_heads": num_heads,
        "head_group": G,
        "head_dim": D,
    }


# ----------------------------------------------------------------------------
# Wrapper
# ----------------------------------------------------------------------------
def bert_crossattnlayer_pallas(x, ctx, prep, ctx_att_mask=None):
    B, Sq, H = x.shape
    Sk = ctx.shape[1]
    NH = prep["num_heads"]
    G = prep["head_group"]
    D = prep["head_dim"]
    GD = G * D
    NG = NH // G

    has_mask = ctx_att_mask is not None

    # Pad Sq / Sk to multiples of 8 so in-kernel reshapes are free relayouts.
    Sq_p = _round_up(Sq, 8)
    Sk_p = _round_up(Sk, 8)
    pad_k = Sk_p - Sk
    if pad_k > 0 and not has_mask:
        has_mask = True
        ctx_att_mask = jnp.zeros((B, Sq, Sk), jnp.float32)

    vmem_limit = _vmem_limit_bytes()
    act_size = jnp.dtype(x.dtype).itemsize
    w_size = jnp.dtype(prep["wq"].dtype).itemsize
    bt = _pick_batch_block(B, Sq_p, Sk_p, H, GD, act_size, w_size, has_mask,
                           int(vmem_limit * 0.7))
    nb = pl.cdiv(B, bt)
    B_p = nb * bt

    # Pad activations (padded batch / query rows are sliced off afterwards).
    if B_p != B or Sq_p != Sq:
        x_in = jnp.pad(x, ((0, B_p - B), (0, Sq_p - Sq), (0, 0)))
    else:
        x_in = x
    if B_p != B or pad_k:
        ctx_in = jnp.pad(ctx, ((0, B_p - B), (0, pad_k if False else 0), (0, 0)))
        ctx_in = jnp.pad(ctx, ((0, B_p - B), (0, pad_k), (0, 0)))
    else:
        ctx_in = ctx

    if has_mask:
        mask = ctx_att_mask.astype(jnp.float32)
        if B_p != B or Sq_p != Sq:
            mask = jnp.pad(mask, ((0, B_p - B), (0, Sq_p - Sq), (0, 0)))
        if pad_k:
            mask = jnp.pad(mask, ((0, 0), (0, 0), (0, pad_k)),
                           constant_values=NEG_MASK)

    kernel = functools.partial(cross_attn_kernel,
                               group=G, head_dim=D, has_mask=has_mask)

    act_spec_q = pl.BlockSpec((bt, Sq_p, H), lambda b, h: (b, 0, 0))
    act_spec_k = pl.BlockSpec((bt, Sk_p, H), lambda b, h: (b, 0, 0))
    mask_spec = pl.BlockSpec((bt, Sq_p, Sk_p), lambda b, h: (b, 0, 0))
    w_cols = pl.BlockSpec((None, H, GD), lambda b, h: (h, 0, 0))
    b_cols = pl.BlockSpec((None, 1, GD), lambda b, h: (h, 0, 0))
    w_rows = pl.BlockSpec((None, GD, H), lambda b, h: (h, 0, 0))
    vec_full = pl.BlockSpec((1, H), lambda b, h: (0, 0))

    in_specs = [act_spec_q, act_spec_k]
    inputs = [x_in, ctx_in]
    if has_mask:
        in_specs.append(mask_spec)
        inputs.append(mask)
    in_specs += [w_cols, b_cols, w_cols, b_cols, w_cols, b_cols,
                 w_rows, vec_full, vec_full, vec_full]
    inputs += [prep["wq"], prep["bq"], prep["wk"], prep["bk"],
               prep["wv"], prep["bv"], prep["wo"], prep["bo"],
               prep["gamma"], prep["beta"]]

    # Advisory cost estimate for the XLA scheduler.
    flops = int(2 * B_p * (Sq_p * H * H + 2 * Sk_p * H * H
                           + 2 * Sq_p * Sk_p * H + Sq_p * H * H))
    transcendentals = int(B_p * NH * Sq_p * Sk_p + B_p * Sq_p)
    bytes_accessed = int(
        act_size * (2 * x_in.size + ctx_in.size)
        + (4 * (B_p * Sq_p * Sk_p) if has_mask else 0)
        + nb * 4 * H * H * w_size)

    out = pl.pallas_call(
        kernel,
        out_shape=jax.ShapeDtypeStruct((B_p, Sq_p, H), x.dtype),
        grid=(nb, NG),
        in_specs=in_specs,
        out_specs=pl.BlockSpec((bt, Sq_p, H), lambda b, h: (b, 0, 0)),
        scratch_shapes=[pltpu.VMEM((bt * Sq_p, H), jnp.float32)],
        compiler_params=pltpu.CompilerParams(
            dimension_semantics=("parallel", "arbitrary"),
            vmem_limit_bytes=vmem_limit),
        cost_estimate=pl.CostEstimate(
            flops=flops, transcendentals=transcendentals,
            bytes_accessed=bytes_accessed),
    )(*inputs)

    if B_p != B or Sq_p != Sq:
        out = out[:B, :Sq, :]
    return out


# ----------------------------------------------------------------------------
# Raw (torch-equivalent) parameters + pure-JAX reference
# ----------------------------------------------------------------------------
def init_params(key, hidden):
    ks = jax.random.split(key, 8)
    scale = 0.02
    return {
        # stored as [in, out] (i.e. torch Linear weight transposed)
        "wq": scale * jax.random.normal(ks[0], (hidden, hidden), jnp.float32),
        "bq": scale * jax.random.normal(ks[1], (1, hidden), jnp.float32),
        "wk": scale * jax.random.normal(ks[2], (hidden, hidden), jnp.float32),
        "bk": scale * jax.random.normal(ks[3], (1, hidden), jnp.float32),
        "wv": scale * jax.random.normal(ks[4], (hidden, hidden), jnp.float32),
        "bv": scale * jax.random.normal(ks[5], (1, hidden), jnp.float32),
        "wo": scale * jax.random.normal(ks[6], (hidden, hidden), jnp.float32),
        "bo": scale * jax.random.normal(ks[7], (1, hidden), jnp.float32),
        "gamma": jnp.ones((1, hidden), jnp.float32),
        "beta": jnp.zeros((1, hidden), jnp.float32),
    }


def reference_jax(x, ctx, params, mask, num_heads):
    """Pure-JAX reference mirroring the PyTorch forward."""
    B, Sq, H = x.shape
    Sk = ctx.shape[1]
    D = H // num_heads
    q = x @ params["wq"] + params["bq"]
    k = ctx @ params["wk"] + params["bk"]
    v = ctx @ params["wv"] + params["bv"]
    q = q.reshape(B, Sq, num_heads, D).transpose(0, 2, 1, 3)
    k = k.reshape(B, Sk, num_heads, D).transpose(0, 2, 1, 3)
    v = v.reshape(B, Sk, num_heads, D).transpose(0, 2, 1, 3)
    s = jnp.einsum("bhqd,bhkd->bhqk", q, k) / math.sqrt(D)
    if mask is not None:
        s = s + mask[:, None, :, :]
    p = jax.nn.softmax(s, axis=-1)
    c = jnp.einsum("bhqk,bhkd->bhqd", p, v).transpose(0, 2, 1, 3).reshape(B, Sq, H)
    h = c @ params["wo"] + params["bo"]
    y = h + x
    mu = jnp.mean(y, axis=-1, keepdims=True)
    var = jnp.mean((y - mu) ** 2, axis=-1, keepdims=True)
    return (y - mu) / jnp.sqrt(var + LN_EPS) * params["gamma"] + params["beta"]


if __name__ == "__main__":
    B, Sq, Sk, H, NH = 2, 8, 16, 32, 4

    key = jax.random.PRNGKey(0)
    kx, kc, kp = jax.random.split(key, 3)
    x = jax.random.normal(kx, (B, Sq, H), jnp.float32)
    ctx = jax.random.normal(kc, (B, Sk, H), jnp.float32)
    params = init_params(kp, H)

    # One-time weight re-layout / scale folding (hoisted out of the hot path).
    # For production, pass weight_dtype=jnp.bfloat16 to halve weight DMA.
    prep = prepare_params(params, NH)

    # Additive mask in BERT convention: 0 = keep, -10000 = masked.
    mask = jnp.zeros((B, Sq, Sk), jnp.float32)
    mask = mask.at[:, :, Sk - 2:].set(NEG_MASK)

    out = bert_crossattnlayer_pallas(x, ctx, prep, mask)
    out = jax.block_until_ready(out)

    ref = reference_jax(x, ctx, params, mask, NH)
    assert out.shape == (B, Sq, H)
    # Tolerance loosened slightly for the EUP approximate reciprocal in softmax.
    assert jnp.allclose(out, ref, atol=2e-3, rtol=2e-3), float(
        jnp.max(jnp.abs(out - ref)))

    print("KERNEL_OK")
</pallas_src>

<mosaic_0001>
module attributes {stable_mosaic.version = 11 : i64} {
  func.func @cross_attn_kernel(%arg0: i32, %arg1: i32, %arg2: memref<1x8x32xf32, #tpu.memory_space<vmem>>, %arg3: memref<1x16x32xf32, #tpu.memory_space<vmem>>, %arg4: memref<1x8x16xf32, #tpu.memory_space<vmem>>, %arg5: memref<1x32x32xf32, #tpu.memory_space<vmem>>, %arg6: memref<1x1x32xf32, #tpu.memory_space<vmem>>, %arg7: memref<1x32x32xf32, #tpu.memory_space<vmem>>, %arg8: memref<1x1x32xf32, #tpu.memory_space<vmem>>, %arg9: memref<1x32x32xf32, #tpu.memory_space<vmem>>, %arg10: memref<1x1x32xf32, #tpu.memory_space<vmem>>, %arg11: memref<1x32x32xf32, #tpu.memory_space<vmem>>, %arg12: memref<1x32xf32, #tpu.memory_space<vmem>>, %arg13: memref<1x32xf32, #tpu.memory_space<vmem>>, %arg14: memref<1x32xf32, #tpu.memory_space<vmem>>, %arg15: memref<1x8x32xf32, #tpu.memory_space<vmem>>, %arg16: memref<8x32xf32, #tpu.memory_space<vmem>>) attributes {dimension_semantics = [#tpu.dimension_semantics<parallel>, #tpu.dimension_semantics<arbitrary>], iteration_bounds = array<i64: 2, 1>, scalar_prefetch = 0 : i64, scratch_operands = 1 : i64, tpu.core_type = #tpu.core_type<tc>, window_params = [{transform_indices = @transform_0, window_bounds = array<i64: 1, 8, 32>}, {transform_indices = @transform_1, window_bounds = array<i64: 1, 16, 32>}, {transform_indices = @transform_2, window_bounds = array<i64: 1, 8, 16>}, {transform_indices = @transform_3, window_bounds = array<i64: 1, 32, 32>}, {transform_indices = @transform_4, window_bounds = array<i64: 1, 1, 32>}, {transform_indices = @transform_5, window_bounds = array<i64: 1, 32, 32>}, {transform_indices = @transform_6, window_bounds = array<i64: 1, 1, 32>}, {transform_indices = @transform_7, window_bounds = array<i64: 1, 32, 32>}, {transform_indices = @transform_8, window_bounds = array<i64: 1, 1, 32>}, {transform_indices = @transform_9, window_bounds = array<i64: 1, 32, 32>}, {pipeline_mode = #tpu.pipeline_mode<synchronous>, transform_indices = @transform_10, window_bounds = array<i64: 1, 32>}, {pipeline_mode = #tpu.pipeline_mode<synchronous>, transform_indices = @transform_11, window_bounds = array<i64: 1, 32>}, {pipeline_mode = #tpu.pipeline_mode<synchronous>, transform_indices = @transform_12, window_bounds = array<i64: 1, 32>}, {transform_indices = @transform_13, window_bounds = array<i64: 1, 8, 32>}]} {
    %c0_i32 = arith.constant 0 : i32
    %0 = arith.cmpi eq, %arg1, %c0_i32 : i32
    %1 = arith.extui %0 : i1 to i32
    %c0_i32_0 = arith.constant 0 : i32
    %2 = arith.cmpi ne, %1, %c0_i32_0 : i32
    scf.if %2 {
      %cst_55 = arith.constant 0.000000e+00 : f32
      %119 = vector.broadcast %cst_55 : f32 to vector<8x32xf32>
      %c0_56 = arith.constant 0 : index
      %c0_57 = arith.constant 0 : index
      %120 = vector.load %arg16[%c0_56, %c0_57] : memref<8x32xf32, #tpu.memory_space<vmem>>, vector<8x32xf32>
      tpu.vector_store %arg16[%c0_56, %c0_57], %119 {strides = array<i32>} : memref<8x32xf32, #tpu.memory_space<vmem>>, vector<8x32xf32>,
    } else {
    }
    %c0 = arith.constant 0 : index
    %c0_1 = arith.constant 0 : index
    %c0_2 = arith.constant 0 : index
    %3 = vector.load %arg2[%c0, %c0_1, %c0_2] : memref<1x8x32xf32, #tpu.memory_space<vmem>>, vector<1x8x32xf32>
    %4 = vector.shape_cast %3 : vector<1x8x32xf32> to vector<8x32xf32>
    %c0_3 = arith.constant 0 : index
    %c0_4 = arith.constant 0 : index
    %c0_5 = arith.constant 0 : index
    %5 = vector.load %arg3[%c0_3, %c0_4, %c0_5] : memref<1x16x32xf32, #tpu.memory_space<vmem>>, vector<1x16x32xf32>
    %6 = vector.shape_cast %5 : vector<1x16x32xf32> to vector<16x32xf32>
    %c0_6 = arith.constant 0 : index
    %c0_7 = arith.constant 0 : index
    %c0_8 = arith.constant 0 : index
    %7 = vector.load %arg5[%c0_6, %c0_7, %c0_8] : memref<1x32x32xf32, #tpu.memory_space<vmem>>, vector<1x32x32xf32>
    %8 = vector.shape_cast %7 : vector<1x32x32xf32> to vector<32x32xf32>
    %cst = arith.constant dense<0.000000e+00> : vector<8x32xf32>
    %9 = tpu.matmul %4, %8, %cst {dimension_numbers = #tpu.dot_dimension_numbers<[1], [0], [0], [1], [0, 0, 1, 1], [], []>} : vector<8x32xf32>, vector<32x32xf32>, vector<8x32xf32> -> vector<8x32xf32>
    %c0_9 = arith.constant 0 : index
    %c0_10 = arith.constant 0 : index
    %c0_11 = arith.constant 0 : index
    %10 = vector.load %arg6[%c0_9, %c0_10, %c0_11] : memref<1x1x32xf32, #tpu.memory_space<vmem>>, vector<1x1x32xf32>
    %11 = vector.shape_cast %10 : vector<1x1x32xf32> to vector<1x32xf32>
    %12 = vector.broadcast %11 : vector<1x32xf32> to vector<8x32xf32>
    %13 = arith.addf %9, %12 : vector<8x32xf32>
    %c0_12 = arith.constant 0 : index
    %c0_13 = arith.constant 0 : index
    %c0_14 = arith.constant 0 : index
    %14 = vector.load %arg7[%c0_12, %c0_13, %c0_14] : memref<1x32x32xf32, #tpu.memory_space<vmem>>, vector<1x32x32xf32>
    %15 = vector.shape_cast %14 : vector<1x32x32xf32> to vector<32x32xf32>
    %cst_15 = arith.constant dense<0.000000e+00> : vector<16x32xf32>
    %16 = tpu.matmul %6, %15, %cst_15 {dimension_numbers = #tpu.dot_dimension_numbers<[1], [0], [0], [1], [0, 0, 1, 1], [], []>} : vector<16x32xf32>, vector<32x32xf32>, vector<16x32xf32> -> vector<16x32xf32>
    %c0_16 = arith.constant 0 : index
    %c0_17 = arith.constant 0 : index
    %c0_18 = arith.constant 0 : index
    %17 = vector.load %arg8[%c0_16, %c0_17, %c0_18] : memref<1x1x32xf32, #tpu.memory_space<vmem>>, vector<1x1x32xf32>
    %18 = vector.shape_cast %17 : vector<1x1x32xf32> to vector<1x32xf32>
    %19 = vector.broadcast %18 : vector<1x32xf32> to vector<16x32xf32>
    %20 = arith.addf %16, %19 : vector<16x32xf32>
    %c0_19 = arith.constant 0 : index
    %c0_20 = arith.constant 0 : index
    %c0_21 = arith.constant 0 : index
    %21 = vector.load %arg9[%c0_19, %c0_20, %c0_21] : memref<1x32x32xf32, #tpu.memory_space<vmem>>, vector<1x32x32xf32>
    %22 = vector.shape_cast %21 : vector<1x32x32xf32> to vector<32x32xf32>
    %cst_22 = arith.constant dense<0.000000e+00> : vector<16x32xf32>
    %23 = tpu.matmul %6, %22, %cst_22 {dimension_numbers = #tpu.dot_dimension_numbers<[1], [0], [0], [1], [0, 0, 1, 1], [], []>} : vector<16x32xf32>, vector<32x32xf32>, vector<16x32xf32> -> vector<16x32xf32>
    %c0_23 = arith.constant 0 : index
    %c0_24 = arith.constant 0 : index
    %c0_25 = arith.constant 0 : index
    %24 = vector.load %arg10[%c0_23, %c0_24, %c0_25] : memref<1x1x32xf32, #tpu.memory_space<vmem>>, vector<1x1x32xf32>
    %25 = vector.shape_cast %24 : vector<1x1x32xf32> to vector<1x32xf32>
    %26 = vector.broadcast %25 : vector<1x32xf32> to vector<16x32xf32>
    %27 = arith.addf %23, %26 : vector<16x32xf32>
    %c0_26 = arith.constant 0 : index
    %c0_27 = arith.constant 0 : index
    %c0_28 = arith.constant 0 : index
    %28 = vector.load %arg4[%c0_26, %c0_27, %c0_28] : memref<1x8x16xf32, #tpu.memory_space<vmem>>, vector<1x8x16xf32>
    %29 = vector.extract_strided_slice %13 {offsets = [0, 0], sizes = [8, 8], strides = [1, 1]} : vector<8x32xf32> to vector<8x8xf32>
    %30 = vector.shape_cast %29 : vector<8x8xf32> to vector<1x8x8xf32>
    %31 = vector.extract_strided_slice %20 {offsets = [0, 0], sizes = [16, 8], strides = [1, 1]} : vector<16x32xf32> to vector<16x8xf32>
    %32 = vector.shape_cast %31 : vector<16x8xf32> to vector<1x16x8xf32>
    %33 = vector.extract_strided_slice %27 {offsets = [0, 0], sizes = [16, 8], strides = [1, 1]} : vector<16x32xf32> to vector<16x8xf32>
    %34 = vector.shape_cast %33 : vector<16x8xf32> to vector<1x16x8xf32>
    "tpu.trace_start"() <{level = 10 : i32, message = "bqd,bkd->bqk"}> : () -> ()
    %cst_29 = arith.constant dense<0.000000e+00> : vector<1x8x16xf32>
    %35 = tpu.matmul %30, %32, %cst_29 {dimension_numbers = #tpu.dot_dimension_numbers<[2], [2], [1], [1], [0, 0, 0, 1, 1, 1], [0], [0]>} : vector<1x8x8xf32>, vector<1x16x8xf32>, vector<1x8x16xf32> -> vector<1x8x16xf32>
    "tpu.trace_stop"() : () -> ()
    %36 = arith.addf %35, %28 : vector<1x8x16xf32>
    %cst_30 = arith.constant dense<0xFF800000> : vector<1x8xf32>
    %37 = vector.multi_reduction <maximumf>, %36, %cst_30 [2] : vector<1x8x16xf32> to vector<1x8xf32>
    %38 = vector.shape_cast %37 : vector<1x8xf32> to vector<1x8x1xf32>
    %39 = vector.broadcast %38 : vector<1x8x1xf32> to vector<1x8x16xf32>
    %40 = arith.subf %36, %39 : vector<1x8x16xf32>
    %41 = math.exp %40 : vector<1x8x16xf32>
    %cst_31 = arith.constant dense<0.000000e+00> : vector<1x8xf32>
    %42 = vector.multi_reduction <add>, %41, %cst_31 [2] : vector<1x8x16xf32> to vector<1x8xf32>
    %43 = vector.shape_cast %42 : vector<1x8xf32> to vector<1x8x1xf32>
    %44 = tpu.reciprocal %43 {approx = true} : vector<1x8x1xf32> -> vector<1x8x1xf32>
    %45 = vector.broadcast %44 : vector<1x8x1xf32> to vector<1x8x16xf32>
    %46 = arith.mulf %41, %45 : vector<1x8x16xf32>
    "tpu.trace_start"() <{level = 10 : i32, message = "bqk,bkd->bqd"}> : () -> ()
    %cst_32 = arith.constant dense<0.000000e+00> : vector<1x8x8xf32>
    %47 = tpu.matmul %46, %34, %cst_32 {dimension_numbers = #tpu.dot_dimension_numbers<[2], [1], [1], [2], [0, 0, 0, 1, 1, 2], [0], [0]>} : vector<1x8x16xf32>, vector<1x16x8xf32>, vector<1x8x8xf32> -> vector<1x8x8xf32>
    "tpu.trace_stop"() : () -> ()
    %48 = vector.shape_cast %47 : vector<1x8x8xf32> to vector<8x8xf32>
    %49 = vector.extract_strided_slice %13 {offsets = [0, 8], sizes = [8, 8], strides = [1, 1]} : vector<8x32xf32> to vector<8x8xf32>
    %50 = vector.shape_cast %49 : vector<8x8xf32> to vector<1x8x8xf32>
    %51 = vector.extract_strided_slice %20 {offsets = [0, 8], sizes = [16, 8], strides = [1, 1]} : vector<16x32xf32> to vector<16x8xf32>
    %52 = vector.shape_cast %51 : vector<16x8xf32> to vector<1x16x8xf32>
    %53 = vector.extract_strided_slice %27 {offsets = [0, 8], sizes = [16, 8], strides = [1, 1]} : vector<16x32xf32> to vector<16x8xf32>
    %54 = vector.shape_cast %53 : vector<16x8xf32> to vector<1x16x8xf32>
    "tpu.trace_start"() <{level = 10 : i32, message = "bqd,bkd->bqk"}> : () -> ()
    %cst_33 = arith.constant dense<0.000000e+00> : vector<1x8x16xf32>
    %55 = tpu.matmul %50, %52, %cst_33 {dimension_numbers = #tpu.dot_dimension_numbers<[2], [2], [1], [1], [0, 0, 0, 1, 1, 1], [0], [0]>} : vector<1x8x8xf32>, vector<1x16x8xf32>, vector<1x8x16xf32> -> vector<1x8x16xf32>
    "tpu.trace_stop"() : () -> ()
    %56 = arith.addf %55, %28 : vector<1x8x16xf32>
    %cst_34 = arith.constant dense<0xFF800000> : vector<1x8xf32>
    %57 = vector.multi_reduction <maximumf>, %56, %cst_34 [2] : vector<1x8x16xf32> to vector<1x8xf32>
    %58 = vector.shape_cast %57 : vector<1x8xf32> to vector<1x8x1xf32>
    %59 = vector.broadcast %58 : vector<1x8x1xf32> to vector<1x8x16xf32>
    %60 = arith.subf %56, %59 : vector<1x8x16xf32>
    %61 = math.exp %60 : vector<1x8x16xf32>
    %cst_35 = arith.constant dense<0.000000e+00> : vector<1x8xf32>
    %62 = vector.multi_reduction <add>, %61, %cst_35 [2] : vector<1x8x16xf32> to vector<1x8xf32>
    %63 = vector.shape_cast %62 : vector<1x8xf32> to vector<1x8x1xf32>
    %64 = tpu.reciprocal %63 {approx = true} : vector<1x8x1xf32> -> vector<1x8x1xf32>
    %65 = vector.broadcast %64 : vector<1x8x1xf32> to vector<1x8x16xf32>
    %66 = arith.mulf %61, %65 : vector<1x8x16xf32>
    "tpu.trace_start"() <{level = 10 : i32, message = "bqk,bkd->bqd"}> : () -> ()
    %cst_36 = arith.constant dense<0.000000e+00> : vector<1x8x8xf32>
    %67 = tpu.matmul %66, %54, %cst_36 {dimension_numbers = #tpu.dot_dimension_numbers<[2], [1], [1], [2], [0, 0, 0, 1, 1, 2], [0], [0]>} : vector<1x8x16xf32>, vector<1x16x8xf32>, vector<1x8x8xf32> -> vector<1x8x8xf32>
    "tpu.trace_stop"() : () -> ()
    %68 = vector.shape_cast %67 : vector<1x8x8xf32> to vector<8x8xf32>
    %69 = vector.extract_strided_slice %13 {offsets = [0, 16], sizes = [8, 8], strides = [1, 1]} : vector<8x32xf32> to vector<8x8xf32>
    %70 = vector.shape_cast %69 : vector<8x8xf32> to vector<1x8x8xf32>
    %71 = vector.extract_strided_slice %20 {offsets = [0, 16], sizes = [16, 8], strides = [1, 1]} : vector<16x32xf32> to vector<16x8xf32>
    %72 = vector.shape_cast %71 : vector<16x8xf32> to vector<1x16x8xf32>
    %73 = vector.extract_strided_slice %27 {offsets = [0, 16], sizes = [16, 8], strides = [1, 1]} : vector<16x32xf32> to vector<16x8xf32>
    %74 = vector.shape_cast %73 : vector<16x8xf32> to vector<1x16x8xf32>
    "tpu.trace_start"() <{level = 10 : i32, message = "bqd,bkd->bqk"}> : () -> ()
    %cst_37 = arith.constant dense<0.000000e+00> : vector<1x8x16xf32>
    %75 = tpu.matmul %70, %72, %cst_37 {dimension_numbers = #tpu.dot_dimension_numbers<[2], [2], [1], [1], [0, 0, 0, 1, 1, 1], [0], [0]>} : vector<1x8x8xf32>, vector<1x16x8xf32>, vector<1x8x16xf32> -> vector<1x8x16xf32>
    "tpu.trace_stop"() : () -> ()
    %76 = arith.addf %75, %28 : vector<1x8x16xf32>
    %cst_38 = arith.constant dense<0xFF800000> : vector<1x8xf32>
    %77 = vector.multi_reduction <maximumf>, %76, %cst_38 [2] : vector<1x8x16xf32> to vector<1x8xf32>
    %78 = vector.shape_cast %77 : vector<1x8xf32> to vector<1x8x1xf32>
    %79 = vector.broadcast %78 : vector<1x8x1xf32> to vector<1x8x16xf32>
    %80 = arith.subf %76, %79 : vector<1x8x16xf32>
    %81 = math.exp %80 : vector<1x8x16xf32>
    %cst_39 = arith.constant dense<0.000000e+00> : vector<1x8xf32>
    %82 = vector.multi_reduction <add>, %81, %cst_39 [2] : vector<1x8x16xf32> to vector<1x8xf32>
    %83 = vector.shape_cast %82 : vector<1x8xf32> to vector<1x8x1xf32>
    %84 = tpu.reciprocal %83 {approx = true} : vector<1x8x1xf32> -> vector<1x8x1xf32>
    %85 = vector.broadcast %84 : vector<1x8x1xf32> to vector<1x8x16xf32>
    %86 = arith.mulf %81, %85 : vector<1x8x16xf32>
    "tpu.trace_start"() <{level = 10 : i32, message = "bqk,bkd->bqd"}> : () -> ()
    %cst_40 = arith.constant dense<0.000000e+00> : vector<1x8x8xf32>
    %87 = tpu.matmul %86, %74, %cst_40 {dimension_numbers = #tpu.dot_dimension_numbers<[2], [1], [1], [2], [0, 0, 0, 1, 1, 2], [0], [0]>} : vector<1x8x16xf32>, vector<1x16x8xf32>, vector<1x8x8xf32> -> vector<1x8x8xf32>
    "tpu.trace_stop"() : () -> ()
    %88 = vector.shape_cast %87 : vector<1x8x8xf32> to vector<8x8xf32>
    %89 = vector.extract_strided_slice %13 {offsets = [0, 24], sizes = [8, 8], strides = [1, 1]} : vector<8x32xf32> to vector<8x8xf32>
    %90 = vector.shape_cast %89 : vector<8x8xf32> to vector<1x8x8xf32>
    %91 = vector.extract_strided_slice %20 {offsets = [0, 24], sizes = [16, 8], strides = [1, 1]} : vector<16x32xf32> to vector<16x8xf32>
    %92 = vector.shape_cast %91 : vector<16x8xf32> to vector<1x16x8xf32>
    %93 = vector.extract_strided_slice %27 {offsets = [0, 24], sizes = [16, 8], strides = [1, 1]} : vector<16x32xf32> to vector<16x8xf32>
    %94 = vector.shape_cast %93 : vector<16x8xf32> to vector<1x16x8xf32>
    "tpu.trace_start"() <{level = 10 : i32, message = "bqd,bkd->bqk"}> : () -> ()
    %cst_41 = arith.constant dense<0.000000e+00> : vector<1x8x16xf32>
    %95 = tpu.matmul %90, %92, %cst_41 {dimension_numbers = #tpu.dot_dimension_numbers<[2], [2], [1], [1], [0, 0, 0, 1, 1, 1], [0], [0]>} : vector<1x8x8xf32>, vector<1x16x8xf32>, vector<1x8x16xf32> -> vector<1x8x16xf32>
    "tpu.trace_stop"() : () -> ()
    %96 = arith.addf %95, %28 : vector<1x8x16xf32>
    %cst_42 = arith.constant dense<0xFF800000> : vector<1x8xf32>
    %97 = vector.multi_reduction <maximumf>, %96, %cst_42 [2] : vector<1x8x16xf32> to vector<1x8xf32>
    %98 = vector.shape_cast %97 : vector<1x8xf32> to vector<1x8x1xf32>
    %99 = vector.broadcast %98 : vector<1x8x1xf32> to vector<1x8x16xf32>
    %100 = arith.subf %96, %99 : vector<1x8x16xf32>
    %101 = math.exp %100 : vector<1x8x16xf32>
    %cst_43 = arith.constant dense<0.000000e+00> : vector<1x8xf32>
    %102 = vector.multi_reduction <add>, %101, %cst_43 [2] : vector<1x8x16xf32> to vector<1x8xf32>
    %103 = vector.shape_cast %102 : vector<1x8xf32> to vector<1x8x1xf32>
    %104 = tpu.reciprocal %103 {approx = true} : vector<1x8x1xf32> -> vector<1x8x1xf32>
    %105 = vector.broadcast %104 : vector<1x8x1xf32> to vector<1x8x16xf32>
    %106 = arith.mulf %101, %105 : vector<1x8x16xf32>
    "tpu.trace_start"() <{level = 10 : i32, message = "bqk,bkd->bqd"}> : () -> ()
    %cst_44 = arith.constant dense<0.000000e+00> : vector<1x8x8xf32>
    %107 = tpu.matmul %106, %94, %cst_44 {dimension_numbers = #tpu.dot_dimension_numbers<[2], [1], [1], [2], [0, 0, 0, 1, 1, 2], [0], [0]>} : vector<1x8x16xf32>, vector<1x16x8xf32>, vector<1x8x8xf32> -> vector<1x8x8xf32>
    "tpu.trace_stop"() : () -> ()
    %108 = vector.shape_cast %107 : vector<1x8x8xf32> to vector<8x8xf32>
    %109 = tpu.concatenate %48, %68, %88, %108 in 1 : vector<8x8xf32>, vector<8x8xf32>, vector<8x8xf32>, vector<8x8xf32> -> vector<8x32xf32>
    %c0_45 = arith.constant 0 : index
    %c0_46 = arith.constant 0 : index
    %110 = vector.load %arg16[%c0_45, %c0_46] : memref<8x32xf32, #tpu.memory_space<vmem>>, vector<8x32xf32>
    %c0_47 = arith.constant 0 : index
    %c0_48 = arith.constant 0 : index
    %c0_49 = arith.constant 0 : index
    %111 = vector.load %arg11[%c0_47, %c0_48, %c0_49] : memref<1x32x32xf32, #tpu.memory_space<vmem>>, vector<1x32x32xf32>
    %112 = vector.shape_cast %111 : vector<1x32x32xf32> to vector<32x32xf32>
    %cst_50 = arith.constant dense<0.000000e+00> : vector<8x32xf32>
    %113 = tpu.matmul %109, %112, %cst_50 {dimension_numbers = #tpu.dot_dimension_numbers<[1], [0], [0], [1], [0, 0, 1, 1], [], []>} : vector<8x32xf32>, vector<32x32xf32>, vector<8x32xf32> -> vector<8x32xf32>
    %114 = arith.addf %110, %113 : vector<8x32xf32>
    %c0_51 = arith.constant 0 : index
    %c0_52 = arith.constant 0 : index
    %115 = vector.load %arg16[%c0_51, %c0_52] : memref<8x32xf32, #tpu.memory_space<vmem>>, vector<8x32xf32>
    tpu.vector_store %arg16[%c0_51, %c0_52], %114 {strides = array<i32>} : memref<8x32xf32, #tpu.memory_space<vmem>>, vector<8x32xf32>,
    %c0_i32_53 = arith.constant 0 : i32
    %116 = arith.cmpi eq, %arg1, %c0_i32_53 : i32
    %117 = arith.extui %116 : i1 to i32
    %c0_i32_54 = arith.constant 0 : i32
    %118 = arith.cmpi ne, %117, %c0_i32_54 : i32
    scf.if %118 {
      %c0_55 = arith.constant 0 : index
      %c0_56 = arith.constant 0 : index
      %119 = vector.load %arg16[%c0_55, %c0_56] : memref<8x32xf32, #tpu.memory_space<vmem>>, vector<8x32xf32>
      %c0_57 = arith.constant 0 : index
      %c0_58 = arith.constant 0 : index
      %120 = vector.load %arg12[%c0_57, %c0_58] : memref<1x32xf32, #tpu.memory_space<vmem>>, vector<1x32xf32>
      %121 = vector.broadcast %120 : vector<1x32xf32> to vector<8x32xf32>
      %122 = arith.addf %119, %121 : vector<8x32xf32>
      %123 = arith.addf %122, %4 : vector<8x32xf32>
      %cst_59 = arith.constant dense<0.000000e+00> : vector<8xf32>
      %124 = vector.multi_reduction <add>, %123, %cst_59 [1] : vector<8x32xf32> to vector<8xf32>
      %125 = vector.shape_cast %124 : vector<8xf32> to vector<8x1xf32>
      %cst_60 = arith.constant 3.200000e+01 : f32
      %126 = vector.broadcast %cst_60 : f32 to vector<8x1xf32>
      %127 = arith.divf %125, %126 : vector<8x1xf32>
      %128 = vector.broadcast %127 : vector<8x1xf32> to vector<8x32xf32>
      %129 = arith.subf %123, %128 : vector<8x32xf32>
      %130 = arith.mulf %129, %129 : vector<8x32xf32>
      %cst_61 = arith.constant dense<0.000000e+00> : vector<8xf32>
      %131 = vector.multi_reduction <add>, %130, %cst_61 [1] : vector<8x32xf32> to vector<8xf32>
      %132 = vector.shape_cast %131 : vector<8xf32> to vector<8x1xf32>
      %cst_62 = arith.constant 3.200000e+01 : f32
      %133 = vector.broadcast %cst_62 : f32 to vector<8x1xf32>
      %134 = arith.divf %132, %133 : vector<8x1xf32>
      %cst_63 = arith.constant 9.99999996E-13 : f32
      %135 = vector.broadcast %cst_63 : f32 to vector<8x1xf32>
      %136 = arith.addf %134, %135 : vector<8x1xf32>
      %137 = math.rsqrt %136 : vector<8x1xf32>
      %138 = vector.broadcast %137 : vector<8x1xf32> to vector<8x32xf32>
      %139 = arith.mulf %129, %138 : vector<8x32xf32>
      %c0_64 = arith.constant 0 : index
      %c0_65 = arith.constant 0 : index
      %140 = vector.load %arg13[%c0_64, %c0_65] : memref<1x32xf32, #tpu.memory_space<vmem>>, vector<1x32xf32>
      %141 = vector.broadcast %140 : vector<1x32xf32> to vector<8x32xf32>
      %142 = arith.mulf %139, %141 : vector<8x32xf32>
      %c0_66 = arith.constant 0 : index
      %c0_67 = arith.constant 0 : index
      %143 = vector.load %arg14[%c0_66, %c0_67] : memref<1x32xf32, #tpu.memory_space<vmem>>, vector<1x32xf32>
      %144 = vector.broadcast %143 : vector<1x32xf32> to vector<8x32xf32>
      %145 = arith.addf %142, %144 : vector<8x32xf32>
      %146 = vector.shape_cast %145 : vector<8x32xf32> to vector<1x8x32xf32>
      %c0_68 = arith.constant 0 : index
      %c0_69 = arith.constant 0 : index
      %c0_70 = arith.constant 0 : index
      %147 = vector.load %arg15[%c0_68, %c0_69, %c0_70] : memref<1x8x32xf32, #tpu.memory_space<vmem>>, vector<1x8x32xf32>
      tpu.vector_store %arg15[%c0_68, %c0_69, %c0_70], %146 {strides = array<i32>} : memref<1x8x32xf32, #tpu.memory_space<vmem>>, vector<1x8x32xf32>,
    } else {
    }
    return
  }
  func.func @transform_0(%arg0: i32, %arg1: i32) -> (i32, i32, i32) {
    %c0_i32 = arith.constant 0 : i32
    %c0_i32_0 = arith.constant 0 : i32
    %c0_i32_1 = arith.constant 0 : i32
    return %arg0, %c0_i32, %c0_i32_0 : i32, i32, i32
  }
  func.func @transform_1(%arg0: i32, %arg1: i32) -> (i32, i32, i32) {
    %c0_i32 = arith.constant 0 : i32
    %c0_i32_0 = arith.constant 0 : i32
    %c0_i32_1 = arith.constant 0 : i32
    return %arg0, %c0_i32, %c0_i32_0 : i32, i32, i32
  }
  func.func @transform_2(%arg0: i32, %arg1: i32) -> (i32, i32, i32) {
    %c0_i32 = arith.constant 0 : i32
    %c0_i32_0 = arith.constant 0 : i32
    %c0_i32_1 = arith.constant 0 : i32
    return %arg0, %c0_i32, %c0_i32_0 : i32, i32, i32
  }
  func.func @transform_3(%arg0: i32, %arg1: i32) -> (i32, i32, i32) {
    %c0_i32 = arith.constant 0 : i32
    %c0_i32_0 = arith.constant 0 : i32
    %c0_i32_1 = arith.constant 0 : i32
    return %arg1, %c0_i32, %c0_i32_0 : i32, i32, i32
  }
  func.func @transform_4(%arg0: i32, %arg1: i32) -> (i32, i32, i32) {
    %c0_i32 = arith.constant 0 : i32
    %c0_i32_0 = arith.constant 0 : i32
    %c0_i32_1 = arith.constant 0 : i32
    return %arg1, %c0_i32, %c0_i32_0 : i32, i32, i32
  }
  func.func @transform_5(%arg0: i32, %arg1: i32) -> (i32, i32, i32) {
    %c0_i32 = arith.constant 0 : i32
    %c0_i32_0 = arith.constant 0 : i32
    %c0_i32_1 = arith.constant 0 : i32
    return %arg1, %c0_i32, %c0_i32_0 : i32, i32, i32
  }
  func.func @transform_6(%arg0: i32, %arg1: i32) -> (i32, i32, i32) {
    %c0_i32 = arith.constant 0 : i32
    %c0_i32_0 = arith.constant 0 : i32
    %c0_i32_1 = arith.constant 0 : i32
    return %arg1, %c0_i32, %c0_i32_0 : i32, i32, i32
  }
  func.func @transform_7(%arg0: i32, %arg1: i32) -> (i32, i32, i32) {
    %c0_i32 = arith.constant 0 : i32
    %c0_i32_0 = arith.constant 0 : i32
    %c0_i32_1 = arith.constant 0 : i32
    return %arg1, %c0_i32, %c0_i32_0 : i32, i32, i32
  }
  func.func @transform_8(%arg0: i32, %arg1: i32) -> (i32, i32, i32) {
    %c0_i32 = arith.constant 0 : i32
    %c0_i32_0 = arith.constant 0 : i32
    %c0_i32_1 = arith.constant 0 : i32
    return %arg1, %c0_i32, %c0_i32_0 : i32, i32, i32
  }
  func.func @transform_9(%arg0: i32, %arg1: i32) -> (i32, i32, i32) {
    %c0_i32 = arith.constant 0 : i32
    %c0_i32_0 = arith.constant 0 : i32
    %c0_i32_1 = arith.constant 0 : i32
    return %arg1, %c0_i32, %c0_i32_0 : i32, i32, i32
  }
  func.func @transform_10(%arg0: i32, %arg1: i32) -> (i32, i32) {
    %c0_i32 = arith.constant 0 : i32
    %c0_i32_0 = arith.constant 0 : i32
    %c0_i32_1 = arith.constant 0 : i32
    return %c0_i32, %c0_i32_0 : i32, i32
  }
  func.func @transform_11(%arg0: i32, %arg1: i32) -> (i32, i32) {
    %c0_i32 = arith.constant 0 : i32
    %c0_i32_0 = arith.constant 0 : i32
    %c0_i32_1 = arith.constant 0 : i32
    return %c0_i32, %c0_i32_0 : i32, i32
  }
  func.func @transform_12(%arg0: i32, %arg1: i32) -> (i32, i32) {
    %c0_i32 = arith.constant 0 : i32
    %c0_i32_0 = arith.constant 0 : i32
    %c0_i32_1 = arith.constant 0 : i32
    return %c0_i32, %c0_i32_0 : i32, i32
  }
  func.func @transform_13(%arg0: i32, %arg1: i32) -> (i32, i32, i32) {
    %c0_i32 = arith.constant 0 : i32
    %c0_i32_0 = arith.constant 0 : i32
    %c0_i32_1 = arith.constant 0 : i32
    return %arg0, %c0_i32, %c0_i32_0 : i32, i32, i32
  }
}

</mosaic_0001>

<bundles_post_ra>
// kernel: tpu_custom_call.1
= control target key start
LH: loop header
LB: loop body
LE: loop exit
PB: predicated region body
PF: predicated region fallthrough
CT: control target
= control target key end

     0   :  { %s3334_s0 = inlined_call_operand.hbm [shape: f32[2,8,32], index: 0, kind: input, shape index: {}]   ;;  %s3335_s1 = inlined_call_operand.hbm [shape: f32[2,16,32], index: 1, kind: input, shape index: {}]   ;;  %s3336_s2 = inlined_call_operand.hbm [shape: f32[2,8,16], index: 2, kind: input, shape index: {}]   ;;  %s3337_s3 = inlined_call_operand.hbm [shape: f32[1,32,32], index: 3, kind: input, shape index: {}]   ;;  %s3338_s4 = inlined_call_operand.vmem [shape: f32[1,1,32], index: 4, kind: input, shape index: {}]   ;;  %s3339_s5 = inlined_call_operand.hbm [shape: f32[1,32,32], index: 5, kind: input, shape index: {}]   ;;  %s3340_s6 = inlined_call_operand.vmem [shape: f32[1,1,32], index: 6, kind: input, shape index: {}]   ;;  %s3341_s7 = inlined_call_operand.hbm [shape: f32[1,32,32], index: 7, kind: input, shape index: {}]   ;;  %s3342_s8 = inlined_call_operand.hbm [shape: f32[1,1,32], index: 8, kind: input, shape index: {}]   ;;  %s3343_s9 = inlined_call_operand.vmem [shape: f32[1,32,32], index: 9, kind: input, shape index: {}]   ;;  %s3344_s10 = inlined_call_operand.vmem [shape: f32[1,32], index: 10, kind: input, shape index: {}]   ;;  %s3345_s11 = inlined_call_operand.vmem [shape: f32[1,32], index: 11, kind: input, shape index: {}]   ;;  %s3346_s12 = inlined_call_operand.vmem [shape: f32[1,32], index: 12, kind: input, shape index: {}]   ;;  %s3347_s13 = inlined_call_operand.hbm [shape: f32[2,8,32], index: 13, kind: output, shape index: {}]  }
   0x1   :  { %3374 = sst [smem:[#allocation29_spill]] %s3335_s1 }
   0x2   :  { %3375 = sst [smem:[#allocation30_spill]] %s3337_s3 }
   0x3   :  { %3376 = sst [smem:[#allocation31_spill]] %s3338_s4 }
   0x4   :  { %3377 = sst [smem:[#allocation32_spill]] %s3341_s7 }
   0x5   :  { %3378 = sst [smem:[#allocation33_spill]] %s3343_s9 }
   0x6   :  { %3379 = sst [smem:[#allocation34_spill]] %s3344_s10 }
   0x7   :  { %3380 = sst [smem:[#allocation35_spill]] %s3345_s11 }
   0x8   :  { %3381 = sst [smem:[#allocation36_spill]] %s3346_s12 }
   0x9   :  { %3382 = sst [smem:[#allocation37_spill]] %s3347_s13 }
   0xa   :  { %18 = vsyncpa [#allocation4], 0 }
   0xb   :  { %20 = vsyncpa [#allocation4 + $0x1], 0 }
   0xc   :  { %21 = vsyncpa [#allocation7], 0 }
   0xd   :  { %23 = vsyncpa [#allocation7 + $0x1], 0 }
   0xe   :  { %24 = vsyncpa [#allocation10], 0 }
   0xf   :  { %25 = vsyncpa [#allocation13], 0 }
  0x10   :  { %26 = vsyncpa [#allocation5], 0 }
  0x11   :  { %28 = vsyncpa [#allocation5 + $0x1], 0  ;;  %s2814_s25 = smov 0   ;;  %s2816_s26 = smov 0  }
  0x12   :  { %s2818_s27 = smov 0   ;;  %s2820_s28 = smov 0  }
  0x13   :  { %s2822_s29 = smov 0   ;;  %s2824_s30 = smov 0  }
  0x14 LB: > { %3383 = sst [smem:[#allocation21_spill]] %s2703_s25  ;;  %s2845_s14 = sadd.s32 4294967295, %s2723_s30   ;;  %s2723_s30 = sphi %s2824_s30, %s34_s30   ;;  %s2719_s29 = sphi %s2822_s29, %s3438_s29   ;;  %s2715_s28 = sphi %s2820_s28, %s3437_s28   ;;  %s2711_s27 = sphi %s2818_s27, %s3433_s27   ;;  %s2707_s26 = sphi %s2816_s26, %s3436_s26   ;;  %s2703_s25 = sphi %s2814_s25, %s3435_s25  }
  0x15   : > { %3384 = sst [smem:[#allocation22_spill]] %s2711_s27  ;;  %s1994_s15 = sadd.s32 4294967294, %s2723_s30  }
  0x16   : > { %3385 = sst [smem:[#allocation23_spill]] %s2715_s28  ;;  %p66_p0 = scmp.ne.s32.totalorder %s2707_s26, %s2703_s25 }
  0x17   : > { %3386 = sst [smem:[#allocation24_spill]] %s2723_s30  ;;  %p3351_p1 = scmp.eq.s32.totalorder %s2845_s14, 0 }
  0x18   : > { %p393_p3 = scmp.eq.s32.totalorder %s1994_s15, 1  ;;  %p1995_p5 = scmp.ge.s32.totalorder %s2723_s30, 1 }
  0x19   : > { %p2854_p4 = por %p3351_p1, %p66_p0  ;;  %p400_p7 = scmp.lt.s32.totalorder %s2723_s30, 3 }
  0x1a   : > { %p2859_p6 = por %p393_p3, %p66_p0  ;;  %s2725_s19 = smov [#allocation9]  }
  0x1b   : > { %s3387_s16 = scalar_select %p2854_p4, 1, 0 }
  0x1c   : > { %s3388_s17 = scalar_select %p2859_p6, 1, 0 }
  0x1d   : > { %p2864_p8 = pnand %p1995_p5, %p400_p7  ;;  %s415_s20 = sshll.u32 %s2725_s19, 4  ;;  %s2868_s20 = int_to_ptr.vmem [resolvable:$true] %s415_s20 }
  0x1e   : > { %3389 = sst [smem:[#allocation25_spill]] %s3388_s17  ;;  %s2726_s22 = smov [#allocation12]  }
  0x1f   : > { %s3390_s18 = scalar_select %p2864_p8, 1, 0 }
  0x20   : > { %p2279_p9 = pneg %p2864_p8  ;;  %s459_s23 = sshll.u32 %s2726_s22, 4  ;;  %s2879_s23 = int_to_ptr.vmem [resolvable:$true] %s459_s23 }
  0x21   : > { %s3392_s3 = sld [smem:[#allocation30_spill]] }
  0x22   : > { %p2875_p11 = pnand %p2279_p9, %p3351_p1 }
  0x24   : > { %s3391_s21 = scalar_select %p2875_p11, 1, 0 }
  0x25   : > { %p2889_p13 = pneg %p2875_p11 }
  0x27   : > { %s2427_s17 = scalar_lea.hbm %s3392_s3, 512 }
  0x28   : > { %p2428_p12 = scmp.ne.s32.totalorder %s3392_s3, %s2427_s17  ;;  %p2434_p5 = scmp.lt.u32.totalorder %s2427_s17, %s3392_s3 }
  0x29   : > { %s3393_s13 = scalar_select %p2889_p13, 1, 0 }
  0x2a   : > { %p2430_p0 = pnand %p2889_p13, %p2428_p12 }
  0x2c   : > { %p2431_p3 = pneg %p2430_p0 }
  0x2e   : > { %p2436_p7 = pnand %p2434_p5, %p2431_p3 }
  0x30   : > { %2439 = shalt.err (!%p2436_p7)
}
  0x31   : > { %s2440_s25 = scalar_lea.vmem %s2868_s20, 512  ;;  %p2448_p2 = scmp.lt.s32.totalorder %s2868_s20, %s2868_s20 }
  0x32   : > { %p2441_p9 = scmp.ne.s32.totalorder %s2868_s20, %s2440_s25  ;;  %p2449_p6 = scmp.lt.s32.totalorder %s2440_s25, %s2440_s25 }
  0x34   : > { %p2443_p10 = pnand %p2441_p9, %p2889_p13  ;;  %p2450_p12 = por %p2449_p6, %p2448_p2 }
  0x36   : > { %p2444_p1 = pneg %p2443_p10 }
  0x38   : > { %p2451_p0 = pnand %p2450_p12, %p2444_p1 }
  0x3a   : > { %2454 = shalt.err (!%p2451_p0)
}
  0x3b   : > { %s3353_s24 = smov 128   ;;  %s3355_s12 = smov 8  }
  0x3c   : > { %2282 = dma.hbm_to_vmem [thread:$0]  (!%p2875_p11), %s3392_s3, 512, %s2868_s20, [#allocation10], %s3353_s24, %s3353_s24, %s3355_s12  }
  0x3d   : > { %s3394_s7 = sld [smem:[#allocation32_spill]] }
  0x43   : > { %s2455_s25 = scalar_lea.hbm %s3394_s7, 512 }
  0x44   : > { %p2456_p1 = scmp.ne.s32.totalorder %s3394_s7, %s2455_s25  ;;  %p2462_p10 = scmp.lt.u32.totalorder %s2455_s25, %s3394_s7 }
  0x46   : > { %p2458_p2 = pnand %p2456_p1, %p2889_p13 }
  0x48   : > { %p2459_p6 = pneg %p2458_p2 }
  0x4a   : > { %p2464_p3 = pnand %p2462_p10, %p2459_p6 }
  0x4c   : > { %2467 = shalt.err (!%p2464_p3)
}
  0x4d   : > { %s2468_s20 = scalar_lea.vmem %s2879_s23, 512  ;;  %p2476_p12 = scmp.lt.s32.totalorder %s2879_s23, %s2879_s23 }
  0x4e   : > { %p2469_p5 = scmp.ne.s32.totalorder %s2879_s23, %s2468_s20  ;;  %p2477_p0 = scmp.lt.s32.totalorder %s2468_s20, %s2468_s20 }
  0x50   : > { %p2471_p7 = pnand %p2469_p5, %p2889_p13  ;;  %p2478_p1 = por %p2477_p0, %p2476_p12 }
  0x52   : > { %p2472_p9 = pneg %p2471_p7 }
  0x54   : > { %p2479_p2 = pnand %p2478_p1, %p2472_p9 }
  0x56   : > { %2482 = shalt.err (!%p2479_p2)
}
  0x57   : > { %2288 = dma.hbm_to_vmem [thread:$0]  (!%p2875_p11), %s3394_s7, 512, %s2879_s23, [#allocation13], %s3353_s24, %s3353_s24, %s3355_s12  }
  0x58   : > { %s46_s11 = sadd.s32 1, %s2719_s29  ;;  %s53_s28 = sadd.s32 1, %s2711_s27 }
  0x59   : > { %p48_p6 = scmp.ge.s32.totalorder %s46_s11, 2  ;;  %p60_p10 = scmp.ne.s32.totalorder %s2711_s27, %s2707_s26 }
  0x5a   : > { %p61_p3 = scmp.eq.s32.totalorder %s2723_s30, 0  ;;  %p2310_p5 = scmp.lt.s32.totalorder %s2723_s30, 2 }
  0x5b   : > { %s3440_s11 = smov (%p48_p6, %s46_s11), 0  ;;  %p3396_p9 = scmp.eq.s32.totalorder %s2845_s14, 1 }
  0x5c   : > { %3395 = sst [smem:[#allocation26_spill]] %s3440_s11  ;;  %p62_p7 = por %p61_p3, %p60_p10 }
  0x5d   : > { %p2949_p12 = por %p3396_p9, %p60_p10  ;;  %s50_s15 = ssub.s32 %s2719_s29, %s3440_s11 }
  0x5e   : > { %s2956_s19 = sand.u32 1, %s2711_s27   ;;  %p51_p0 = scmp.eq.s32.totalorder %s50_s15, 0 }
  0x5f   : > { %s3397_s17 = scalar_select %p2949_p12, 1, 0 }
  0x60   : > { %p2958_p1 = pnand %p2310_p5, %p62_p7  ;;  %s521_s22 = sand.u32 1, %s2723_s30  }
  0x61   : > { %3398 = sst [smem:[#allocation27_spill]] %s3397_s17  ;;  %s2006_s25 = sshll.u32 %s2956_s19, 4 }
  0x62   : > { %s3399_s23 = scalar_select %p2958_p1, 1, 0 }
  0x63   : > { %s2965_s20 = scalar_select %p51_p0, %s2711_s27, %s53_s28  }
  0x64   : > { %s2052_s9 = sshll.u32 %s2719_s29, 8  ;;  %s3401_s1 = sld [smem:[#allocation29_spill]] }
  0x65   : > { %3400 = sst [smem:[#allocation28_spill]] %s2965_s20  ;;  %s525_s15 = scalar_lea.vmem [#allocation6], %s2006_s25 }
  0x66   : > { %s532_s3 = sshll.u32 %s525_s15, 4  ;;  %s2975_s7 = scalar_lea.sflag [#allocation7], %s521_s22  ;;  %s2973_s3 = int_to_ptr.vmem [resolvable:$true] %s532_s3 }
  0x67   : > { %p2981_p6 = pneg %p2958_p1 }
  0x69   : > { %s3402_s28 = scalar_select %p2981_p6, 1, 0 }
  0x6a   : > { %s2971_s12 = scalar_lea.hbm %s3401_s1, %s2052_s9  ;;  %s2488_s25 = scalar_lea.hbm %s3401_s1, 512 }
  0x6b   : > { %s2483_s11 = scalar_lea.hbm %s2971_s12, 256  ;;  %p2489_p5 = scmp.lt.u32.totalorder %s2971_s12, %s3401_s1 }
  0x6c   : > { %p2484_p2 = scmp.ne.s32.totalorder %s2971_s12, %s2483_s11  ;;  %p2490_p7 = scmp.lt.u32.totalorder %s2488_s25, %s2483_s11 }
  0x6d   : > { %p2492_p0 = scmp.lt.u32.totalorder %s2483_s11, %s2971_s12 }
  0x6e   : > { %p2486_p10 = pnand %p2981_p6, %p2484_p2  ;;  %p2491_p9 = por %p2490_p7, %p2489_p5 }
  0x70   : > { %p2487_p3 = pneg %p2486_p10  ;;  %p2493_p12 = por %p2492_p0, %p2491_p9 }
  0x72   : > { %p2494_p4 = pnand %p2493_p12, %p2487_p3 }
  0x74   : > { %2497 = shalt.err (!%p2494_p4)
}
  0x75   : > { %s2498_s22 = scalar_lea.vmem %s2973_s3, 256  ;;  %s2729_s24 = smov [#allocation6]  }
  0x76   : > { %p2499_p2 = scmp.ne.s32.totalorder %s2973_s3, %s2498_s22  ;;  %s2503_s9 = sshll.u32 %s2729_s24, 4  ;;  %s2504_s9 = int_to_ptr.vmem [resolvable:$false] %s2503_s9 }
  0x77   : > { %s2505_s10 = scalar_lea.vmem %s2504_s9, 512  ;;  %p2506_p11 = scmp.lt.s32.totalorder %s2973_s3, %s2504_s9 }
  0x78   : > { %p2501_p10 = pnand %p2499_p2, %p2981_p6  ;;  %p2507_p13 = scmp.lt.s32.totalorder %s2505_s10, %s2498_s22 }
  0x7a   : > { %p2502_p8 = pneg %p2501_p10  ;;  %p2508_p5 = por %p2507_p13, %p2506_p11 }
  0x7c   : > { %p2509_p7 = pnand %p2508_p5, %p2502_p8 }
  0x7e   : > { %2512 = shalt.err (!%p2509_p7)
}
  0x7f   : > { %s3403_s11 = smov 8   ;;  %s3404_s25 = smov 128  }
  0x80   : > { %2298 = dma.hbm_to_vmem [thread:$0]  (!%p2958_p1), %s2971_s12, 256, %s2973_s3, %s2975_s7, %s3404_s25, %s3404_s25, %s3403_s11  }
  0x81   : > { %s2730_s15 = smov [#allocation11]   ;;  %s2731_s24 = smov [#allocation14]  }
  0x82   : > { %s437_s1 = sshll.u32 %s2730_s15, 4  ;;  %s475_s20 = sshll.u32 %s2731_s24, 4  ;;  %s438_s1 = int_to_ptr.vmem [resolvable:$true] %s437_s1  ;;  %s476_s20 = int_to_ptr.vmem [resolvable:$true] %s475_s20 }
  0x83   : > { %s2513_s10 = scalar_lea.hbm %s3339_s5, 512  ;;  %p3405_p8 = scmp.ne.s32.totalorder %s3393_s13, 0 }
  0x84   : > { %p2514_p4 = scmp.ne.s32.totalorder %s3339_s5, %s2513_s10  ;;  %p2520_p12 = scmp.lt.u32.totalorder %s2513_s10, %s3339_s5 }
  0x86   : > { %p2516_p11 = pnand %p2514_p4, %p3405_p8 }
  0x88   : > { %p2517_p13 = pneg %p2516_p11 }
  0x8a   : > { %p2522_p3 = pnand %p2520_p12, %p2517_p13 }
  0x8c   : > { %2525 = shalt.err (!%p2522_p3)
}
  0x8d   : > { %s2526_s3 = scalar_lea.vmem %s438_s1, 512  ;;  %p2534_p10 = scmp.lt.s32.totalorder %s438_s1, %s438_s1 }
  0x8e   : > { %p2527_p9 = scmp.ne.s32.totalorder %s438_s1, %s2526_s3  ;;  %p2535_p5 = scmp.lt.s32.totalorder %s2526_s3, %s2526_s3 }
  0x90   : > { %p2529_p0 = pnand %p2527_p9, %p3405_p8  ;;  %p2536_p7 = por %p2535_p5, %p2534_p10 }
  0x92   : > { %p2530_p2 = pneg %p2529_p0 }
  0x94   : > { %p2537_p1 = pnand %p2536_p7, %p2530_p2 }
  0x96   : > { %2540 = shalt.err (!%p2537_p1)
}
  0x97   : > { %p3406_p4 = scmp.ne.s32.totalorder %s3391_s21, 0  ;;  %s2541_s17 = scalar_lea.hbm %s3342_s8, 16 }
  0x98   : > { %p2542_p11 = scmp.ne.s32.totalorder %s3342_s8, %s2541_s17  ;;  %p2548_p12 = scmp.lt.u32.totalorder %s2541_s17, %s3342_s8 }
  0x99   : > { %2285 = dma.hbm_to_vmem [thread:$0]  (!%p3406_p4), %s3339_s5, 512, %s438_s1, [#allocation10], %s3404_s25, %s3404_s25, %s3403_s11  }
  0x9a   : > { %p2544_p1 = pnand %p2542_p11, %p3405_p8 }
  0x9c   : > { %p2545_p13 = pneg %p2544_p1 }
  0x9e   : > { %p2550_p3 = pnand %p2548_p12, %p2545_p13 }
  0xa0   : > { %2553 = shalt.err (!%p2550_p3)
}
  0xa1   : > { %s2554_s10 = scalar_lea.vmem %s476_s20, 16  ;;  %s2561_s1 = scalar_lea.vmem %s476_s20, 32 }
  0xa2   : > { %p2555_p9 = scmp.ne.s32.totalorder %s476_s20, %s2554_s10  ;;  %p2562_p10 = scmp.lt.s32.totalorder %s476_s20, %s476_s20 }
  0xa3   : > { %p2563_p5 = scmp.lt.s32.totalorder %s2561_s1, %s2554_s10 }
  0xa4   : > { %p2557_p0 = pnand %p2555_p9, %p3405_p8 }
  0xa5   : > { %p2564_p7 = por %p2563_p5, %p2562_p10 }
  0xa6   : > { %p2558_p2 = pneg %p2557_p0 }
  0xa8   : > { %p2565_p6 = pnand %p2564_p7, %p2558_p2 }
  0xaa   : > { %2568 = shalt.err (!%p2565_p6)
}
  0xab   : > { %2291 = dma.hbm_to_vmem [thread:$0]  (!%p3406_p4), %s3342_s8, 16, %s476_s20, [#allocation13]  }
  0xac   : > { %s2004_s13 = sshll.u32 %s2956_s19, 3  ;;  %s2005_s3 = sshll.u32 %s2719_s29, 7 }
  0xad   : > { %s3052_s30 = scalar_lea.hbm %s3334_s0, %s2005_s3  ;;  %s507_s21 = scalar_lea.vmem [#allocation3], %s2004_s13 }
  0xae   : > { %s514_s12 = sshll.u32 %s507_s21, 4  ;;  %s3061_s20 = scalar_lea.hbm %s3336_s2, %s2005_s3  ;;  %s3056_s12 = int_to_ptr.vmem [resolvable:$true] %s514_s12 }
  0xaf   : > { %s504_s24 = scalar_lea.sflag [#allocation4], %s2956_s19  ;;  %s2569_s9 = scalar_lea.hbm %s3052_s30, 128 }
  0xb0   : > { %p2570_p6 = scmp.ne.s32.totalorder %s3052_s30, %s2569_s9  ;;  %p3407_p8 = scmp.ne.s32.totalorder %s3402_s28, 0 }
  0xb1   : > { %s2574_s1 = scalar_lea.hbm %s3334_s0, 256  ;;  %p2575_p1 = scmp.lt.u32.totalorder %s3052_s30, %s3334_s0 }
  0xb2   : > { %p2572_p4 = pnand %p2570_p6, %p3407_p8  ;;  %p2576_p13 = scmp.lt.u32.totalorder %s2574_s1, %s2569_s9 }
  0xb3   : > { %p2578_p3 = scmp.lt.u32.totalorder %s2569_s9, %s3052_s30 }
  0xb4   : > { %p2573_p11 = pneg %p2572_p4  ;;  %p2577_p12 = por %p2576_p13, %p2575_p1 }
  0xb6   : > { %p2579_p9 = por %p2578_p3, %p2577_p12 }
  0xb8   : > { %p2580_p0 = pnand %p2579_p9, %p2573_p11 }
  0xba   : > { %2583 = shalt.err (!%p2580_p0)
}
  0xbb   : > { %s2584_s3 = scalar_lea.vmem %s3056_s12, 128  ;;  %s2732_s4 = smov [#allocation3]  }
  0xbc   : > { %p2585_p2 = scmp.ne.s32.totalorder %s3056_s12, %s2584_s3  ;;  %s2589_s27 = sshll.u32 %s2732_s4, 4  ;;  %s2590_s27 = int_to_ptr.vmem [resolvable:$false] %s2589_s27 }
  0xbd   : > { %s2591_s21 = scalar_lea.vmem %s2590_s27, 256  ;;  %p2592_p7 = scmp.lt.s32.totalorder %s3056_s12, %s2590_s27 }
  0xbe   : > { %p2587_p10 = pnand %p2585_p2, %p3407_p8  ;;  %p2593_p6 = scmp.lt.s32.totalorder %s2591_s21, %s2584_s3 }
  0xc0   : > { %p2588_p5 = pneg %p2587_p10  ;;  %p2594_p4 = por %p2593_p6, %p2592_p7 }
  0xc2   : > { %p2595_p1 = pnand %p2594_p4, %p2588_p5 }
  0xc4   : > { %2598 = shalt.err (!%p2595_p1)
}
  0xc5   : > { %p3408_p11 = scmp.ne.s32.totalorder %s3399_s23, 0  ;;  %s546_s17 = scalar_lea.vmem [#allocation8], %s2004_s13 }
  0xc6   : > { %s553_s15 = sshll.u32 %s546_s17, 4  ;;  %s2599_s9 = scalar_lea.hbm %s3061_s20, 128  ;;  %s554_s15 = int_to_ptr.vmem [resolvable:$true] %s553_s15 }
  0xc7   : > { %2295 = dma.hbm_to_vmem [thread:$0]  (!%p3408_p11), %s3052_s30, 128, %s3056_s12, %s504_s24  }
  0xc8   : > { %p2600_p13 = scmp.ne.s32.totalorder %s3061_s20, %s2599_s9  ;;  %s2604_s1 = scalar_lea.hbm %s3336_s2, 256 }
  0xc9   : > { %p2605_p9 = scmp.lt.u32.totalorder %s3061_s20, %s3336_s2  ;;  %p2606_p0 = scmp.lt.u32.totalorder %s2604_s1, %s2599_s9 }
  0xca   : > { %p2602_p12 = pnand %p2600_p13, %p3407_p8  ;;  %p2608_p10 = scmp.lt.u32.totalorder %s2599_s9, %s3061_s20 }
  0xcb   : > { %p2607_p2 = por %p2606_p0, %p2605_p9 }
  0xcc   : > { %p2603_p3 = pneg %p2602_p12 }
  0xcd   : > { %p2609_p5 = por %p2608_p10, %p2607_p2 }
  0xcf   : > { %p2610_p7 = pnand %p2609_p5, %p2603_p3 }
  0xd1   : > { %2613 = shalt.err (!%p2610_p7)
}
  0xd2   : > { %s2614_s19 = scalar_lea.vmem %s554_s15, 128  ;;  %s2733_s13 = smov [#allocation8]  }
  0xd3   : > { %p2615_p6 = scmp.ne.s32.totalorder %s554_s15, %s2614_s19  ;;  %s2619_s30 = sshll.u32 %s2733_s13, 4  ;;  %s2620_s30 = int_to_ptr.vmem [resolvable:$false] %s2619_s30 }
  0xd4   : > { %s2621_s12 = scalar_lea.vmem %s2620_s30, 256  ;;  %p2622_p13 = scmp.lt.s32.totalorder %s554_s15, %s2620_s30 }
  0xd5   : > { %p2617_p4 = pnand %p2615_p6, %p3407_p8  ;;  %p2623_p12 = scmp.lt.s32.totalorder %s2621_s12, %s2614_s19 }
  0xd7   : > { %p2618_p1 = pneg %p2617_p4  ;;  %p2624_p11 = por %p2623_p12, %p2622_p13 }
  0xd9   : > { %p2625_p0 = pnand %p2624_p11, %p2618_p1 }
  0xdb   : > { %2628 = shalt.err (!%p2625_p0)
}
  0xdc   : > { %p3409_p9 = scmp.ne.s32.totalorder %s3399_s23, 0  ;;  %p3410_p3 = scmp.ne.s32.totalorder %s3390_s18, 0 }
  0xdd   : > { %s3108_s28 = sand.u32 (!%p3410_p3), 1, %s2707_s26   ;;  %p3411_p8 = scmp.ne.s32.totalorder (!%p3410_p3), %s3387_s16, 0 }
  0xde   : > { %2301 = dma.hbm_to_vmem [thread:$0]  (!%p3409_p9), %s3061_s20, 128, %s554_s15, %s2975_s7  }
  0xdf   : > { %562 = sbr.rel (%p3410_p3) target bundleno = 3494 (0xda6), region = 72  ;;  %s3111_s24 = sshll.u32 (!%p3410_p3), %s3108_s28, 3 }
  0xe0   : > { %s565_s3 = scalar_lea.sflag (!%p3410_p3), [#allocation4], %s3108_s28  ;;  %s568_s4 = scalar_lea.vmem (!%p3410_p3), [#allocation3], %s3111_s24 }
  0xe6   : > { %2682 = dma.done.wait (%p3411_p8), %s565_s3, 128  }
  0xe7   : > { %2684 = vsyncadd (%p3411_p8), %s565_s3, 4294967168  ;;  %s573_s7 = sand.u32 1, %s2845_s14   ;;  %s2013_s18 = sshll.u32 %s3108_s28, 4 }
  0xe8   : > { %s574_s23 = scalar_lea.sflag [#allocation7], %s573_s7  ;;  %s3121_s20 = scalar_lea.vmem [#allocation6], %s2013_s18 }
  0xe9   : > { %2686 = dma.done.wait (%p3411_p8), %s574_s23, 384  }
  0xea   : > { %2688 = vsyncadd (%p3411_p8), %s574_s23, 4294966912  ;;  %s586_s27 = scalar_lea.vmem [#allocation8], %s3111_s24  ;;  %p3412_p11 = scmp.eq.s32.totalorder %s2845_s14, 0 }
  0xec   : > { %2690 = dma.done.wait (%p3412_p11), [#allocation10], 1024   ;;  %p3413_p2 = pmov %p3412_p11 }
  0xee   : > { %2692 = vsyncadd (%p3413_p2), [#allocation10], 4294966272  ;;  %p3414_p10 = pmov %p3413_p2 }
  0xef   : > { %p3415_p5 = pmov %p3413_p2 }
  0xf0   : > { %2694 = dma.done.wait (%p3414_p10), [#allocation13], 528  }
  0xf1   : > { %2696 = vsyncadd (%p3415_p5), [#allocation13], 4294966768  ;;  %vm681_vm0 = vcmask 261120   ;;  %v2734_v0 = vmov 0.0|0.0   ;;  %vm2735_vm1 = vmmov 0   ;;  %v2736_v1 = vmov 0.0  }
  0xf2   : > { %2199 = vmatprep.subr.bf16.mxu0 %v2734_v0  ;;  %2107 = vmatprep.mubr.msk.f32.mxu0 %vm2735_vm1, %v2736_v1  ;;  %682 = vst.msk [vmem:[#allocation2] sm:$0xff] %vm681_vm0, %v2736_v1  ;;  %v771_v2 = vld [vmem:[#allocation11] sm:$0xff]  ;;  %v772_v3 = vld [vmem:[#allocation11 + $0x8] sm:$0xff]  ;;  %v773_v4 = vld [vmem:[#allocation11 + $0x10] sm:$0xff]  ;;  %vm950_vm2 = vcmask 64512   ;;  %s3418_s15 = sld [smem:[#allocation31_spill]] }
  0xf3   : > { %v2205_v5 = vpack.c.bf16 %v772_v3, %v771_v2  ;;  %v774_v6 = vld [vmem:[#allocation11 + $0x18] sm:$0xff]  ;;  %v684_v7 = vld [vmem:[%s3121_s20] sm:$0xff]  ;;  %v687_v10 = vld [vmem:[#allocation9 + $0x8] sm:$0xff]  ;;  %s2737_s9 = smov 120   ;;  %vm1030_vm4 = vcmask 130048   ;;  %s2738_s22 = smov 112  }
  0xf4   : > { %v2209_v8 = vpack.c.bf16 %v774_v6, %v773_v4  ;;  %2118 = vmatprep.mubr.msk.f32.mxu1 %vm681_vm0, %v684_v7  ;;  %v686_v9 = vld [vmem:[#allocation9] sm:$0xff]  ;;  %v688_v11 = vld [vmem:[#allocation9 + $0x10] sm:$0xff]  ;;  %v689_v13 = vld [vmem:[#allocation9 + $0x18] sm:$0xff]  ;;  %s2739_s10 = smov 104   ;;  %s2740_s1 = smov 8   ;;  %vm1647_vm5 = vcmask 195584  }
  0xf5   : > { %2206 = vmatprep.subr.bf16.mxu1 %v2205_v5  ;;  %v2200_v12 = vpack.c.bf16 %v687_v10, %v686_v9  ;;  %v2203_v14 = vpack.c.bf16 %v689_v13, %v688_v11  ;;  %v685_v15 = vld [vmem:[%s3121_s20 + $0x8] sm:$0xff]  ;;  %vm3161_vm3 = vmpackc.low %vm950_vm2, %vm950_vm2  ;;  %v863_v29 = vld [vmem:[#allocation12] sm:$0xff]  ;;  %s2741_s11 = smov 16   ;;  %s3419_s13 = sld [smem:[#allocation33_spill]] }
  0xf6   : > { %2208 = vmatpush3.bf16.msra.mxu1 %v2205_v5  ;;  %v3147_v16 = vld [vmem:[%s568_s4] sm:$0xff]  ;;  %v2022_v17 = vld [vmem:[%s3340_s6] ss:$0 sm:$0xff]  ;;  %v865_v31 = vld [vmem:[#allocation12 + $0x10] sm:$0xff]  ;;  %s2742_s23 = smov 24   ;;  %s3420_s14 = sld [smem:[#allocation34_spill]] }
  0xf7   : > { %2210 = vmatprep.subr.bf16.mxu1 %v2209_v8  ;;  %2201 = vmatpush3.bf16.msra.mxu0 %v2200_v12  ;;  %v864_v30 = vld [vmem:[#allocation12 + $0x8] sm:$0xff]  ;;  %v866_v33 = vld [vmem:[#allocation12 + $0x18] sm:$0xff]  ;;  %v2025_v47 = vld [vmem:[#allocation14] ss:$0 sm:$0xff]  ;;  %s3421_s16 = sld [smem:[#allocation23_spill]]  ;;  %s3422_s21 = sld [smem:[#allocation27_spill]] }
  0xf8   : > { %2202 = vmatprep.subr.bf16.mxu0 %v2734_v0  ;;  %v2020_v25 = vld [vmem:[%s3418_s15] ss:$0 sm:$0xff]  ;;  %v2213_v32 = vpack.c.bf16 %v864_v30, %v863_v29  ;;  %v2217_v34 = vpack.c.bf16 %v866_v33, %v865_v31  ;;  %s665_s25 = scalar_lea.vmem [#allocation15], %s3111_s24  ;;  %s3425_s3 = sld [smem:[#allocation37_spill]] }
  0xf9   : > { %v3189_v35 = vld [vmem:[%s586_s27] sm:$0xff]  ;;  %s1787_s19 = sshll.u32 %s665_s25, 4  ;;  %s1774_s7 = scalar_lea.sflag [#allocation5], %s3108_s28  ;;  %s3286_s19 = int_to_ptr.vmem [resolvable:$true] %s1787_s19 }
  0xfa   : > { %2212 = vmatpush3.bf16.msra.mxu1 %v2209_v8  ;;  %s2629_s18 = scalar_lea.vmem %s3286_s19, 128  ;;  %s2743_s24 = smov [#allocation15]  }
  0xfb   : > { %2204 = vmatpush3.bf16.msra.mxu0 %v2203_v14  ;;  %2221 = vmatprep.subr.bf16.mxu1 %v2734_v0  ;;  %p2630_p7 = scmp.ne.s32.totalorder %s3286_s19, %s2629_s18 }
  0xfc   : > { %2214 = vmatprep.subr.bf16.mxu0 %v2213_v32 }
  0xfd   : > { %2119 = vmatmul.mubr.msk.f32.vlgmr.msra.gmra.mrb[0].mxu1 %vm681_vm0, %v685_v15  ;;  %p3426_p6 = scmp.ne.s32.totalorder %s3422_s21, 0 }
  0xfe   : > { %2108 = vmatmul.mubr.msk.f32.vlgmr.msra.gmra.mrb[0].mxu0 %vm681_vm0, %v3147_v16  ;;  %2136 = vmatprep.mubr.msk.f32.mxu1 %vm2735_vm1, %v2736_v1 }
  0xff   : > { %2129 = vmatprep.mubr.msk.f32.mxu0 %vm681_vm0, %v684_v7  ;;  %2216 = vmatpush3.bf16.msra.mxu0 %v2213_v32  ;;  %p2631_p4 = pnand %p2630_p7, %p3426_p6 }
 0x100   : > { %2218 = vmatprep.subr.bf16.mxu0 %v2217_v34 }
 0x101   : > { %p2632_p1 = pneg %p2631_p4 }
 0x103   : > { %2220 = vmatpush3.bf16.msra.mxu0 %v2217_v34 }
 0x104   : > { %2232 = vmatprep.subr.bf16.mxu0 %v2734_v0 }
 0x106   : > { %2130 = vmatmul.mubr.msk.f32.vlgmr.msra.gmra.mrb[2].mxu0 %vm681_vm0, %v685_v15 }
 0x107   : > { %2157 = vmatprep.mubr.msk.f32.mxu0 %vm2735_vm1, %v2736_v1 }
 0x1d0   : > { %v2120_v18 = vpop.f32.mrb[0].mxu1 }
 0x1d1   : > { %v860_v19 = vadd.f32 %v2120_v18, %v2022_v17  ;;  %v854_v20 = vpop.f32.mrb[1].mxu1  ;;  %v767_v21 = vpop.f32.mrb[0].mxu0 }
 0x1d2   : > { %v855_v22 = vadd.f32 %v2022_v17, %v854_v20  ;;  %v2109_v23 = vpop.f32.mrb[1].mxu0  ;;  %v3174_v28 = vadd.f32 %v2020_v25, %v767_v21 }
 0x1d4   : > { %v2222_v26 = vpack.c.bf16 %v860_v19, %v855_v22  ;;  %v3168_v27 = vpack.i.bf16 %v860_v19, %v855_v22 }
 0x1d6   : > { %2380 = vrot.lane.b32.xlu1 %v3168_v27, %s2737_s9  ;;  %2224 = vmatpush3.bf16.xpose.msk.msra.mxu1 %vm3161_vm3, %v2222_v26 }
 0x1d7   : > { %2225 = vmatprep.subr.bf16.mxu1 %v2734_v0 }
 0x1d9   : > { %v2131_v40 = vpop.f32.mrb[2].mxu0 }
 0x1da   : > { %1115 = vrot.lane.b32.xlu1 %v3174_v28, %s2737_s9  ;;  %v940_v41 = vpop.f32.mrb[3].mxu0  ;;  %v946_v48 = vadd.f32 %v2131_v40, %v2025_v47 }
 0x1db   : > { %v941_v49 = vadd.f32 %v2025_v47, %v940_v41 }
 0x1dd   : > { %2137 = vmatmul.mubr.msk.f32.vlgmr.msra.gmra.mrb[2].mxu1 %vm950_vm2, %v3174_v28  ;;  %v2226_v50 = vpack.c.bf16 %v946_v48, %v941_v49  ;;  %v3194_v51 = vpack.i.bf16 %v946_v48, %v941_v49 }
 0x1de   : > { %2143 = vmatprep.mubr.msk.f32.mxu1 %vm2735_vm1, %v2736_v1 }
 0x1df   : > { %2227 = vmatpush3.bf16.msra.mxu1 %v2226_v50 }
 0x1e0   : > { %2228 = vmatprep.subr.bf16.mxu1 %v2734_v0 }
 0x248   : > { %v2381_v53 = vpop.permute.xlu1 %2380 }
 0x249   : > { %v2383_v54 = vunpack.i.h.bf16 %v2381_v53  ;;  %v2382_v55 = vunpack.i.l.bf16 %v2381_v53 }
 0x24b   : > { %v2229_v58 = vpack.c.bf16 %v2383_v54, %v2382_v55 }
 0x24c   : > { %v1116_v59 = vpop.permute.xlu1 %1115 }
 0x2b0   : > { %v1026_v36 = vpop.f32.mrb[2].mxu1 }
 0x2b1   : > { %v1027_v37 = vadd.f32 %v1026_v36, %v3189_v35  ;;  %v2138_v38 = vpop.f32.mrb[3].mxu1 }
 0x2b3   : > { %v1031_v39 = vsel %vm1030_vm4, %v1027_v37, -inf }
 0x2b4   : > { %1032 = vmax.xlane.f32.xlu0 %v1031_v39 }
 0x341   : > { %v1033_v42 = vpop.xlane.xlu0 %1032 }
 0x342   : > { %v1034_v43 = vsub.f32 %v1027_v37, %v1033_v42 }
 0x344   : > { %v1035_v44 = vmul.f32 1.442695, %v1034_v43 }
 0x346   : > { %2409 = vpow2.f32 %v1035_v44 }
 0x350   : > { %v2410_v45 = vpop.eup %2409 }
 0x351   : > { %v1037_v46 = vsel %vm1030_vm4, %v2410_v45, 0.0 }
 0x352   : > { %1038 = vadd.xlane.f32.xlu0 %v1037_v46 }
 0x3df   : > { %v1039_v52 = vpop.xlane.xlu0 %1038 }
 0x3e0   : > { %2411 = vrcp.f32 %v1039_v52 }
 0x3ea   : > { %v2412_v56 = vpop.eup %2411 }
 0x3eb   : > { %v1041_v57 = vmul.f32 %v2412_v56, %v2410_v45 }
 0x3ed   : > { %2144 = vmatmul.mubr.msk.f32.vlgmr.msra.gmra.mrb[4].mxu1 %vm1030_vm4, %v1041_v57 }
 0x3ee   : > { %2231 = vmatpush3.bf16.xpose.msk.msra.mxu1 %vm3161_vm3, %v2229_v58  ;;  %2150 = vmatprep.mubr.msk.f32.mxu1 %vm2735_vm1, %v2736_v1 }
 0x3ef   : > { %2239 = vmatprep.subr.bf16.mxu1 %v2734_v0 }
 0x3f5   : > { %2151 = vmatmul.mubr.msk.f32.vlgmr.msra.gmra.mrb[6].mxu1 %vm950_vm2, %v1116_v59 }
 0x3f6   : > { %2171 = vmatprep.mubr.msk.f32.mxu1 %vm2735_vm1, %v2736_v1 }
 0x4c0   : > { %v3206_v60 = vpop.f32.mrb[4].mxu1 }
 0x4c1   : > { %v2145_v61 = vpop.f32.mrb[5].mxu1 }
 0x4c8   : > { %v1193_v62 = vpop.f32.mrb[6].mxu1 }
 0x4c9   : > { %v1194_v63 = vadd.f32 %v1193_v62, %v3189_v35  ;;  %v2152_v2 = vpop.f32.mrb[7].mxu1 }
 0x4ca   : > { %v1650_v2 = vld [vmem:[%s3419_s13] sm:$0xff] }
 0x4cb   : > { %v1197_v3 = vsel %vm1030_vm4, %v1194_v63, -inf }
 0x4cc   : > { %1198 = vmax.xlane.f32.xlu0 %v1197_v3  ;;  %v1651_v3 = vld [vmem:[%s3419_s13 + $0x8] sm:$0xff] }
 0x4e2   : > { %2385 = vrot.lane.b32.xlu0 %v3194_v51, %s2737_s9  ;;  %s3423_s9 = sld [smem:[#allocation35_spill]] }
 0x4e6   : > { %2390 = vrot.lane.b32.xlu0 %v3168_v27, %s2738_s22 }
 0x4ea   : > { %1289 = vrot.lane.b32.xlu0 %v3174_v28, %s2738_s22 }
 0x559   : > { %v1199_v4 = vpop.xlane.xlu0 %1198 }
 0x55a   : > { %v1200_v5 = vsub.f32 %v1194_v63, %v1199_v4  ;;  %v1652_v4 = vld [vmem:[%s3419_s13 + $0x10] sm:$0xff] }
 0x55c   : > { %v1201_v6 = vmul.f32 1.442695, %v1200_v5  ;;  %v2250_v5 = vpack.c.bf16 %v1651_v3, %v1650_v2 }
 0x55d   : > { %v2386_v7 = vpop.permute.xlu0 %2385 }
 0x55e   : > { %2413 = vpow2.f32 %v1201_v6  ;;  %v2388_v8 = vunpack.i.h.bf16 %v2386_v7  ;;  %v2387_v9 = vunpack.i.l.bf16 %v2386_v7  ;;  %v1653_v6 = vld [vmem:[%s3419_s13 + $0x18] sm:$0xff] }
 0x55f   : > { %v2253_v7 = vpack.c.bf16 %v1653_v6, %v1652_v4 }
 0x560   : > { %v2233_v10 = vpack.c.bf16 %v2388_v8, %v2387_v9 }
 0x561   : > { %v2391_v18 = vpop.permute.xlu0 %2390 }
 0x562   : > { %2234 = vmatpush3.bf16.msra.mxu0 %v2233_v10  ;;  %v2393_v20 = vunpack.i.h.bf16 %v2391_v18  ;;  %v2392_v21 = vunpack.i.l.bf16 %v2391_v18 }
 0x563   : > { %2235 = vmatprep.subr.bf16.mxu0 %v2734_v0 }
 0x564   : > { %v2236_v25 = vpack.c.bf16 %v2393_v20, %v2392_v21 }
 0x565   : > { %v1290_v26 = vpop.permute.xlu0 %1289 }
 0x568   : > { %v2414_v11 = vpop.eup %2413 }
 0x569   : > { %v1203_v12 = vsel %vm1030_vm4, %v2414_v11, 0.0 }
 0x56a   : > { %1204 = vadd.xlane.f32.xlu1 %v1203_v12 }
 0x57b   : > { %2395 = vrot.lane.b32.xlu1 %v3194_v51, %s2738_s22 }
 0x57f   : > { %2400 = vrot.lane.b32.xlu1 %v3168_v27, %s2739_s10 }
 0x5f7   : > { %v1205_v13 = vpop.xlane.xlu1 %1204 }
 0x5f8   : > { %2415 = vrcp.f32 %v1205_v13 }
 0x5fb   : > { %v2396_v14 = vpop.permute.xlu1 %2395 }
 0x5fc   : > { %v2398_v15 = vunpack.i.h.bf16 %v2396_v14  ;;  %v2397_v17 = vunpack.i.l.bf16 %v2396_v14 }
 0x5fe   : > { %v2240_v19 = vpack.c.bf16 %v2398_v15, %v2397_v17  ;;  %v1649_v15 = vld [vmem:[#allocation2] sm:$0xff] }
 0x5ff   : > { %v2401_v40 = vpop.permute.xlu1 %2400 }
 0x600   : > { %2241 = vmatpush3.bf16.msra.mxu1 %v2240_v19  ;;  %v2403_v42 = vunpack.i.h.bf16 %v2401_v40  ;;  %v2402_v43 = vunpack.i.l.bf16 %v2401_v40  ;;  %v2045_v19 = vld [vmem:[%s3420_s14] ss:$0 sm:$0xff] }
 0x601   : > { %2242 = vmatprep.subr.bf16.mxu1 %v2734_v0 }
 0x602   : > { %v2416_v22 = vpop.eup %2415  ;;  %v2243_v46 = vpack.c.bf16 %v2403_v42, %v2402_v43 }
 0x603   : > { %v1207_v23 = vmul.f32 %v2416_v22, %v2414_v11 }
 0x605   : > { %2158 = vmatmul.mubr.msk.f32.vlgmr.msra.gmra.mrb[4].mxu0 %vm1030_vm4, %v1207_v23 }
 0x606   : > { %2238 = vmatpush3.bf16.xpose.msk.msra.mxu0 %vm3161_vm3, %v2236_v25  ;;  %2164 = vmatprep.mubr.msk.f32.mxu0 %vm2735_vm1, %v2736_v1 }
 0x607   : > { %2246 = vmatprep.subr.bf16.mxu0 %v2734_v0 }
 0x60d   : > { %2165 = vmatmul.mubr.msk.f32.vlgmr.msra.gmra.mrb[6].mxu0 %vm950_vm2, %v1290_v26 }
 0x60e   : > { %2185 = vmatprep.mubr.msk.f32.mxu0 %vm2735_vm1, %v2736_v1 }
 0x6d8   : > { %v1285_v27 = vpop.f32.mrb[4].mxu0 }
 0x6d9   : > { %v2159_v29 = vpop.f32.mrb[5].mxu0 }
 0x6e0   : > { %v1367_v30 = vpop.f32.mrb[6].mxu0 }
 0x6e1   : > { %v1368_v31 = vadd.f32 %v1367_v30, %v3189_v35  ;;  %v2166_v32 = vpop.f32.mrb[7].mxu0 }
 0x6e3   : > { %v1371_v33 = vsel %vm1030_vm4, %v1368_v31, -inf }
 0x6e4   : > { %1372 = vmax.xlane.f32.xlu0 %v1371_v33 }
 0x771   : > { %v1373_v34 = vpop.xlane.xlu0 %1372 }
 0x772   : > { %v1374_v36 = vsub.f32 %v1368_v31, %v1373_v34 }
 0x774   : > { %v1375_v37 = vmul.f32 1.442695, %v1374_v36 }
 0x776   : > { %2417 = vpow2.f32 %v1375_v37 }
 0x780   : > { %v2418_v38 = vpop.eup %2417 }
 0x781   : > { %v1377_v39 = vsel %vm1030_vm4, %v2418_v38, 0.0 }
 0x782   : > { %1378 = vadd.xlane.f32.xlu1 %v1377_v39 }
 0x793   : > { %1461 = vrot.lane.b32.xlu1 %v3174_v28, %s2739_s10 }
 0x80f   : > { %v1379_v41 = vpop.xlane.xlu1 %1378 }
 0x810   : > { %2419 = vrcp.f32 %v1379_v41 }
 0x813   : > { %v1462_v47 = vpop.permute.xlu1 %1461 }
 0x81a   : > { %v2420_v44 = vpop.eup %2419 }
 0x81b   : > { %v1381_v45 = vmul.f32 %v2420_v44, %v2418_v38 }
 0x81d   : > { %2172 = vmatmul.mubr.msk.f32.vlgmr.msra.gmra.mrb[8].mxu1 %vm1030_vm4, %v1381_v45 }
 0x81e   : > { %2245 = vmatpush3.bf16.xpose.msk.msra.mxu1 %vm3161_vm3, %v2243_v46  ;;  %2178 = vmatprep.mubr.msk.f32.mxu1 %vm2735_vm1, %v2736_v1 }
 0x825   : > { %2179 = vmatmul.mubr.msk.f32.vlgmr.msra.gmra.mrb[10].mxu1 %vm950_vm2, %v1462_v47 }
 0x8f0   : > { %v1457_v28 = vpop.f32.mrb[8].mxu1 }
 0x8f1   : > { %v2173_v48 = vpop.f32.mrb[9].mxu1 }
 0x8f8   : > { %v1539_v49 = vpop.f32.mrb[10].mxu1 }
 0x8f9   : > { %v1540_v50 = vadd.f32 %v1539_v49, %v3189_v35  ;;  %v2180_v52 = vpop.f32.mrb[11].mxu1 }
 0x8fb   : > { %v1543_v53 = vsel %vm1030_vm4, %v1540_v50, -inf }
 0x8fc   : > { %1544 = vmax.xlane.f32.xlu0 %v1543_v53 }
 0x912   : > { %2405 = vrot.lane.b32.xlu0 %v3194_v51, %s2739_s10 }
 0x916   : > { %1634 = vrot.lane.b32.xlu0 %v1285_v27, %s2740_s1  ;;  %s3424_s1 = sld [smem:[#allocation36_spill]] }
 0x91a   : > { %1638 = vrot.lane.b32.xlu0 %v1457_v28, %s2741_s11  ;;  %s2049_s11 = sshll.u32 %s3421_s16, 7 }
 0x91b   : > { %s3284_s4 = scalar_lea.hbm %s3425_s3, %s2049_s11 }
 0x91c   : > { %v2047_v36 = vld [vmem:[%s3424_s1] ss:$0 sm:$0xff] }
 0x989   : > { %v1545_v24 = vpop.xlane.xlu0 %1544 }
 0x98a   : > { %v1546_v54 = vsub.f32 %v1540_v50, %v1545_v24 }
 0x98c   : > { %v1547_v55 = vmul.f32 1.442695, %v1546_v54 }
 0x98d   : > { %v2406_v56 = vpop.permute.xlu0 %2405 }
 0x98e   : > { %2421 = vpow2.f32 %v1547_v55  ;;  %v2408_v57 = vunpack.i.h.bf16 %v2406_v56  ;;  %v2407_v58 = vunpack.i.l.bf16 %v2406_v56 }
 0x990   : > { %v2247_v59 = vpack.c.bf16 %v2408_v57, %v2407_v58 }
 0x991   : > { %v1635_v9 = vpop.permute.xlu0 %1634 }
 0x992   : > { %2248 = vmatpush3.bf16.msra.mxu0 %v2247_v59  ;;  %v1645_v11 = vsel %vm950_vm2, %v3206_v60, %v1635_v9 }
 0x993   : > { %2249 = vmatprep.subr.bf16.mxu0 %v2734_v0 }
 0x995   : > { %v1639_v10 = vpop.permute.xlu0 %1638 }
 0x996   : > { %v1646_v12 = vsel %vm1030_vm4, %v1645_v11, %v1639_v10 }
 0x998   : > { %v2422_v35 = vpop.eup %2421 }
 0x999   : > { %v1549_v61 = vsel %vm1030_vm4, %v2422_v35, 0.0 }
 0x99a   : > { %1550 = vadd.xlane.f32.xlu1 %v1549_v61 }
 0xa27   : > { %v1551_v51 = vpop.xlane.xlu1 %1550 }
 0xa28   : > { %2423 = vrcp.f32 %v1551_v51 }
 0xa32   : > { %v2424_v62 = vpop.eup %2423 }
 0xa33   : > { %v1553_v63 = vmul.f32 %v2424_v62, %v2422_v35 }
 0xa35   : > { %2186 = vmatmul.mubr.msk.f32.vlgmr.msra.gmra.mrb[8].mxu0 %vm1030_vm4, %v1553_v63 }
 0xa36   : > { %2196 = vmatprep.mubr.msk.f32.mxu0 %vm2735_vm1, %v2736_v1  ;;  %2251 = vmatpush3.bf16.msra.mxu0 %v2250_v5 }
 0xa37   : > { %2252 = vmatprep.subr.bf16.mxu0 %v2734_v0 }
 0xa3a   : > { %2254 = vmatpush3.bf16.msra.mxu0 %v2253_v7 }
 0xb08   : > { %v1629_v1 = vpop.f32.mrb[8].mxu0 }
 0xb09   : > { %1642 = vrot.lane.b32.xlu0 %v1629_v1, %s2742_s23  ;;  %v2187_v8 = vpop.f32.mrb[9].mxu0  ;;  %s2633_s23 = sshll.u32 %s2743_s24, 4  ;;  %s2634_s23 = int_to_ptr.vmem [resolvable:$false] %s2633_s23 }
 0xb0a   : > { %s2635_s20 = scalar_lea.vmem %s2634_s23, 256  ;;  %p2636_p13 = scmp.lt.s32.totalorder %s3286_s19, %s2634_s23 }
 0xb0b   : > { %p2637_p12 = scmp.lt.s32.totalorder %s2635_s20, %s2629_s18 }
 0xb0d   : > { %p2638_p0 = por %p2637_p12, %p2636_p13 }
 0xb0f   : > { %p2639_p9 = pnand %p2638_p0, %p2632_p1 }
 0xb7b   : > { %v1643_v13 = vpop.permute.xlu0 %1642 }
 0xb7c   : > { %v1648_v14 = vsel %vm1647_vm5, %v1646_v12, %v1643_v13 }
 0xb7d   : > { %2197 = vmatmul.mubr.msk.f32.vlgmr.msra.gmra.mrb[10].mxu0 %vm681_vm0, %v1648_v14 }
 0xc50   : > { %v1723_v17 = vpop.f32.mrb[10].mxu0 }
 0xc51   : > { %v1727_v0 = vadd.f32 %v1723_v17, %v1649_v15  ;;  %v2198_v18 = vpop.f32.mrb[11].mxu0 }
 0xc53   : > { %1728 = vst.msk [vmem:[#allocation2] sm:$0xff] %vm681_vm0, %v1727_v0 }
 0xc5a   : > { %v1732_v20 = vld [vmem:[#allocation2] sm:$0xff] }
 0xc5b   : > { %v1740_v21 = vadd.f32 %v2045_v19, %v1732_v20 }
 0xc5d   : > { %v1741_v60 = vadd.f32 %v1740_v21, %v3147_v16  ;;  %v2046_v16 = vld [vmem:[%s3423_s9] ss:$0 sm:$0xff] }
 0xc5f   : > { %v1742_v22 = vsel %vm681_vm0, %v1741_v60, 0.0 }
 0xc60   : > { %1743 = vadd.xlane.f32.xlu1 %v1742_v22 }
 0xced   : > { %v1744_v23 = vpop.xlane.xlu1 %1743 }
 0xcee   : > { %v1746_v25 = vmul.f32 0.03125, %v1744_v23 }
 0xcf0   : > { %v1747_v26 = vsub.f32 %v1741_v60, %v1746_v25 }
 0xcf2   : > { %v1748_v27 = vmul.f32 %v1747_v26, %v1747_v26 }
 0xcf4   : > { %v1749_v29 = vsel %vm681_vm0, %v1748_v27, 0.0 }
 0xcf5   : > { %1750 = vadd.xlane.f32.xlu0 %v1749_v29 }
 0xd82   : > { %v1751_v30 = vpop.xlane.xlu0 %1750 }
 0xd83   : > { %v1752_v31 = vmul.f32 0.03125, %v1751_v30 }
 0xd85   : > { %v1753_v32 = vadd.f32 1e-12, %v1752_v31 }
 0xd87   : > { %2425 = vrsqrt.f32 %v1753_v32 }
 0xd91   : > { %v2426_v33 = vpop.eup %2425 }
 0xd92   : > { %v1755_v34 = vmul.f32 %v2426_v33, %v1747_v26 }
 0xd94   : > { %v1763_v37 = vmul.f32 %v2046_v16, %v1755_v34 }
 0xd96   : > { %v1771_v38 = vadd.f32 %v2047_v36, %v1763_v37 }
 0xd98   : > { %1772 = vst.msk [vmem:[%s665_s25] sm:$0xff] %vm681_vm0, %v1771_v38 }
 0xd99   : > { %2642 = shalt.err (!%p2639_p9)
}
 0xd9a   : > { %s2643_s28 = scalar_lea.hbm %s3284_s4, 128  ;;  %s2647_s16 = scalar_lea.hbm %s3425_s3, 256 }
 0xd9b   : > { %p2644_p3 = scmp.ne.s32.totalorder %s3284_s4, %s2643_s28  ;;  %p2648_p2 = scmp.lt.u32.totalorder %s3284_s4, %s3425_s3 }
 0xd9c   : > { %p2649_p10 = scmp.lt.u32.totalorder %s2647_s16, %s2643_s28  ;;  %p2651_p7 = scmp.lt.u32.totalorder %s2643_s28, %s3284_s4 }
 0xd9d   : > { %p2645_p8 = pnand %p2644_p3, %p3426_p6 }
 0xd9e   : > { %p2650_p5 = por %p2649_p10, %p2648_p2 }
 0xd9f   : > { %p2646_p11 = pneg %p2645_p8 }
 0xda0   : > { %p2652_p4 = por %p2651_p7, %p2650_p5 }
 0xda2   : > { %p2653_p1 = pnand %p2652_p4, %p2646_p11 }
 0xda4   : > { %2656 = shalt.err (!%p2653_p1)
}
 0xda5   : > { %2277 = dma.vmem_to_hbm [thread:$0]  (%p3426_p6), %s3286_s19, 128, %s3284_s4, %s1774_s7  }
 0xda6 PF: > { %s3427_s9 = sld [smem:[#allocation21_spill]]  ;;  %s3428_s22 = sld [smem:[#allocation25_spill]] }
 0xda7   : > { %s3429_s10 = sld [smem:[#allocation24_spill]] }
 0xdac   : > { %s1799_s1 = sand.u32 1, %s3427_s9   ;;  %p3430_p13 = scmp.ne.s32.totalorder %s3428_s22, 0 }
 0xdad   : > { %p3431_p12 = scmp.ge.s32.totalorder %s3429_s10, 2  ;;  %s1800_s11 = scalar_lea.sflag [#allocation5], %s1799_s1 }
 0xdaf   : > { %p2303_p0 = pnand %p3431_p12, %p3430_p13 }
 0xdb1   : > { %2698 = dma.done.wait (!%p2303_p0), %s1800_s11, 128  }
 0xdb2   : > { %2700 = vsyncadd (!%p2303_p0), %s1800_s11, 4294967168  ;;  %s34_s30 = sadd.s32 1, %s3429_s10   ;;  %s3432_s12 = sld [smem:[#allocation22_spill]] }
 0xdb3   : > { %p31_p9 = scmp.ge.s32.totalorder %s34_s30, 4   ;;  %s3433_s27 = sld [smem:[#allocation28_spill]] }
 0xdb4   : > { %s3434_s21 = sld [smem:[#allocation26_spill]]  ;;  %s3435_s25 = smov %s2707_s26 }
 0xdb5   : > { %s3437_s28 = smov %s2719_s29  ;;  %33 = sbr.rel (!%p31_p9) target bundleno = 20 (0x14), region = 178 }
 0xdb8   : > { %s3436_s26 = smov %s3432_s12 }
 0xdba   : > { %s3438_s29 = smov %s3434_s21 }
 0xdbc   :  { %1805 = vsyncpa [#allocation4], 1 }
 0xdbd   :  { %1807 = vsyncpa [#allocation4 + $0x1], 1 }
 0xdbe   :  { %1808 = vsyncpa [#allocation7], 1 }
 0xdbf   :  { %1810 = vsyncpa [#allocation7 + $0x1], 1 }
 0xdc0   :  { %1811 = vsyncpa [#allocation10], 1 }
 0xdc1   :  { %1812 = vsyncpa [#allocation13], 1 }
 0xdc2   :  { %1813 = vsyncpa [#allocation5], 1 }
 0xdc3   :  { %1815 = vsyncpa [#allocation5 + $0x1], 1 }

</bundles_post_ra>
